<compile_context>
chip_gen: v7x
topology: tpu7x:2x2x1
jax: 0.10.0
libtpu: 0.0.40
codegen_flags: <defaults>
</compile_context>

<pallas_src>
import jax
import jax.numpy as jnp
from jax import lax
from jax.experimental import pallas as pl
from jax.experimental.pallas import tpu as pltpu

# ----- problem sizes (small, consistent with the module) -----
B, T, S = 2, 8, 8          # batch, decoder seq len, encoder seq len
D, H, F = 32, 4, 64        # num_hiddens, num_heads, ffn_num_hiddens
HD = D // H
EPS = 1e-5                 # PyTorch LayerNorm default eps
NEG = -1e6                 # d2l masked-softmax fill value (additive bias form)


# ----------------- in-kernel helpers -----------------
def _layernorm(v, gamma, beta):
    mu = jnp.mean(v, axis=-1, keepdims=True)
    var = jnp.mean((v - mu) ** 2, axis=-1, keepdims=True)
    return (v - mu) * lax.rsqrt(var + EPS) * gamma + beta


def _softmax(s):
    m = jnp.max(s, axis=-1, keepdims=True)
    e = jnp.exp(s - m)
    # denominator normalize on the EUP via approximate reciprocal (VPU divide avoided)
    return e * pl.reciprocal(jnp.sum(e, axis=-1, keepdims=True), approx=True)


def _mha(q_in, kv_in, tq, tk, wq, wkv, wo, bias, head_masks):
    """Multi-head attention with the batch folded into rows.

    q_in: (B*tq, D), kv_in: (B*tk, D)
    wq:  (D, D)   query projection with the 1/sqrt(HD) score scale pre-folded
    wkv: (D, 2D)  fused [Wk | Wv] projection
    wo:  (D, D)   output projection
    bias: additive mask (0 / -1e6), broadcastable to (B, tq, tk)
    head_masks: list of H (1, 1, D) 0/1 lane masks selecting each head's feature block
    """
    q = jnp.dot(q_in, wq, preferred_element_type=jnp.float32).reshape(B, tq, D)
    kv = jnp.dot(kv_in, wkv, preferred_element_type=jnp.float32)          # (B*tk, 2D)
    k = kv[:, :D].reshape(B, tk, D)
    v = kv[:, D:].reshape(B, tk, D)

    concat = jnp.zeros((B, tq, D), jnp.float32)
    for hm in head_masks:          # static unroll over H heads; no slices / transposes
        s = jnp.einsum('bqd,bkd->bqk', q * hm, k,
                       preferred_element_type=jnp.float32) + bias
        p = _softmax(s)
        concat = concat + jnp.einsum('bqk,bkd->bqd', p, v * hm,
                                     preferred_element_type=jnp.float32)
    return jnp.dot(concat.reshape(B * tq, D), wo, preferred_element_type=jnp.float32)


# ----------------- the Pallas kernel (single invocation, whole problem in VMEM) -----------------
def decoder_block_kernel(vlen_ref, x_ref, enc_ref,
                         a1_q_ref, a1_kv_ref, a1_o_ref,
                         a2_q_ref, a2_kv_ref, a2_o_ref,
                         w1_ref, b1_ref, w2_ref, b2_ref,
                         g_ref, be_ref, o_ref):
    x = x_ref[...].reshape(B * T, D)        # (B,T,D) -> (B*T,D): tile-aligned leading merge
    enc = enc_ref[...].reshape(B * S, D)

    # --- additive attention-mask biases, built once and shared across all heads ---
    row = lax.broadcasted_iota(jnp.int32, (T, T), 0)
    col = lax.broadcasted_iota(jnp.int32, (T, T), 1)
    causal_bias = jnp.where(col <= row, 0.0, NEG).astype(jnp.float32)[None]      # (1,T,T)
    ecol = lax.broadcasted_iota(jnp.int32, (B, 1, S), 2)
    vlen = vlen_ref[...]                                                         # (B,1,1) int32
    enc_bias = jnp.where(ecol < vlen, 0.0, NEG).astype(jnp.float32)              # (B,1,S)

    # --- per-head 0/1 lane masks (block-diagonal head structure), built once ---
    lane = lax.broadcasted_iota(jnp.int32, (1, 1, D), 2)
    head_masks = [jnp.where((lane >= h * HD) & (lane < (h + 1) * HD), 1.0, 0.0)
                  .astype(jnp.float32) for h in range(H)]

    # TODO(synk): dropout inside attention / AddLNorm is omitted (deterministic p=0 semantics).

    # 1) masked (causal) self-attention + Add&LayerNorm
    att1 = _mha(x, x, T, T, a1_q_ref[...], a1_kv_ref[...], a1_o_ref[...],
                causal_bias, head_masks)
    y = _layernorm(x + att1, g_ref[0], be_ref[0])

    # 2) encoder-decoder attention (masked by src_valid_lens) + Add&LayerNorm
    att2 = _mha(y, enc, T, S, a2_q_ref[...], a2_kv_ref[...], a2_o_ref[...],
                enc_bias, head_masks)
    z = _layernorm(y + att2, g_ref[1], be_ref[1])

    # 3) position-wise FFN + Add&LayerNorm
    h1 = jnp.maximum(
        jnp.dot(z, w1_ref[...], preferred_element_type=jnp.float32) + b1_ref[...], 0.0)
    ffn = jnp.dot(h1, w2_ref[...], preferred_element_type=jnp.float32) + b2_ref[...]
    out = _layernorm(z + ffn, g_ref[2], be_ref[2])
    o_ref[...] = out.reshape(B, T, D).astype(o_ref.dtype)


# ----------------- wrapper -----------------
def transformer_decoder_block(dec_x, enc_seqs, src_valid_lens,
                              a1_q, a1_kv, a1_o, a2_q, a2_kv, a2_o,
                              w1, b1, w2, b2, g, be):
    # src_valid_lens as a tiny (B,1,1) int32 vector input (vector compare in-kernel).
    vlen = src_valid_lens.reshape(B, 1, 1).astype(jnp.int32)
    n_in = 15
    # Whole problem (<100 KB) fits in VMEM on v5e/v6e (128 MiB) and v7x (64 MiB).
    # If T/S/D are scaled up, re-introduce a grid + BlockSpec tiling and re-derive the
    # block size against the target generation's VMEM / vmem_limit_bytes.
    return pl.pallas_call(
        decoder_block_kernel,
        out_shape=jax.ShapeDtypeStruct((B, T, D), jnp.float32),
        in_specs=[pl.BlockSpec(memory_space=pltpu.MemorySpace.VMEM) for _ in range(n_in)],
        out_specs=pl.BlockSpec(memory_space=pltpu.MemorySpace.VMEM),
    )(vlen, dec_x, enc_seqs, a1_q, a1_kv, a1_o, a2_q, a2_kv, a2_o,
      w1, b1, w2, b2, g, be)


# ----------------- one-time offline weight preparation -----------------
def prepare_params(a1, a2):
    """Offline re-layout of the attention weights for the kernel:
       - fold the 1/sqrt(HD) attention score scale into Wq,
       - fuse [Wk | Wv] along the output dim into a single (D, 2D) matrix."""
    def prep(w4):                       # w4: (4, D, D) = [Wq, Wk, Wv, Wo]
        wq = w4[0] * (1.0 / (HD ** 0.5))
        wkv = jnp.concatenate([w4[1], w4[2]], axis=1)
        return wq, wkv, w4[3]
    a1_q, a1_kv, a1_o = prep(a1)
    a2_q, a2_kv, a2_o = prep(a2)
    return a1_q, a1_kv, a1_o, a2_q, a2_kv, a2_o


# ----------------- pure-JAX reference (for correctness check) -----------------
def reference(dec_x, enc_seqs, src_valid_lens, a1, a2, w1, b1, w2, b2, g, be):
    def mha(q_in, kv_in, w, mask):
        Q, K, V = q_in @ w[0], kv_in @ w[1], kv_in @ w[2]
        Qh = Q.reshape(B, -1, H, HD).transpose(0, 2, 1, 3)
        Kh = K.reshape(B, -1, H, HD).transpose(0, 2, 1, 3)
        Vh = V.reshape(B, -1, H, HD).transpose(0, 2, 1, 3)
        s = jnp.einsum('bhqd,bhkd->bhqk', Qh, Kh) / (HD ** 0.5)
        s = jnp.where(mask, s, -1e6)
        p = jax.nn.softmax(s, axis=-1)
        o = jnp.einsum('bhqk,bhkd->bhqd', p, Vh).transpose(0, 2, 1, 3).reshape(B, -1, D)
        return o @ w[3]

    def ln(v, gamma, beta):
        mu = v.mean(-1, keepdims=True)
        var = ((v - mu) ** 2).mean(-1, keepdims=True)
        return (v - mu) / jnp.sqrt(var + EPS) * gamma + beta

    causal = (jnp.arange(T)[None, :] <= jnp.arange(T)[:, None])[None, None]
    y = ln(dec_x + mha(dec_x, dec_x, a1, causal), g[0], be[0])
    enc_mask = jnp.arange(S)[None, None, None, :] < src_valid_lens[:, None, None, None]
    z = ln(y + mha(y, enc_seqs, a2, enc_mask), g[1], be[1])
    ffn = jnp.maximum(z @ w1 + b1, 0.0) @ w2 + b2
    return ln(z + ffn, g[2], be[2])


if __name__ == "__main__":
    key = jax.random.PRNGKey(0)
    ks = jax.random.split(key, 10)

    dec_x = jax.random.normal(ks[0], (B, T, D), jnp.float32)
    enc_seqs = jax.random.normal(ks[1], (B, S, D), jnp.float32)
    src_valid_lens = jnp.array([5, 8], dtype=jnp.int32)

    scale = 0.1
    a1 = scale * jax.random.normal(ks[2], (4, D, D), jnp.float32)   # [Wq, Wk, Wv, Wo] (no bias)
    a2 = scale * jax.random.normal(ks[3], (4, D, D), jnp.float32)
    w1 = scale * jax.random.normal(ks[4], (D, F), jnp.float32)
    b1 = scale * jax.random.normal(ks[5], (1, F), jnp.float32)
    w2 = scale * jax.random.normal(ks[6], (F, D), jnp.float32)
    b2 = scale * jax.random.normal(ks[7], (1, D), jnp.float32)
    g = jnp.ones((3, 1, D), jnp.float32)                            # LayerNorm gammas
    be = jnp.zeros((3, 1, D), jnp.float32)                          # LayerNorm betas

    a1_q, a1_kv, a1_o, a2_q, a2_kv, a2_o = prepare_params(a1, a2)

    out = transformer_decoder_block(dec_x, enc_seqs, src_valid_lens,
                                    a1_q, a1_kv, a1_o, a2_q, a2_kv, a2_o,
                                    w1, b1, w2, b2, g, be)
    out = jax.block_until_ready(out)

    ref = reference(dec_x, enc_seqs, src_valid_lens, a1, a2, w1, b1, w2, b2, g, be)
    assert out.shape == (B, T, D)
    max_err = float(jnp.max(jnp.abs(out - ref)))
    # tolerance accounts for the approximate-reciprocal softmax normalization
    assert jnp.allclose(out, ref, atol=1e-2, rtol=1e-2), (
        f"mismatch vs pure-JAX reference (max abs err = {max_err:.3e})")
    print("KERNEL_OK")
</pallas_src>

<mosaic_0001>
module attributes {stable_mosaic.version = 11 : i64} {
  func.func @decoder_block_kernel(%arg0: memref<2x1x1xi32, #tpu.memory_space<vmem>>, %arg1: memref<2x8x32xf32, #tpu.memory_space<vmem>>, %arg2: memref<2x8x32xf32, #tpu.memory_space<vmem>>, %arg3: memref<32x32xf32, #tpu.memory_space<vmem>>, %arg4: memref<32x64xf32, #tpu.memory_space<vmem>>, %arg5: memref<32x32xf32, #tpu.memory_space<vmem>>, %arg6: memref<32x32xf32, #tpu.memory_space<vmem>>, %arg7: memref<32x64xf32, #tpu.memory_space<vmem>>, %arg8: memref<32x32xf32, #tpu.memory_space<vmem>>, %arg9: memref<32x64xf32, #tpu.memory_space<vmem>>, %arg10: memref<1x64xf32, #tpu.memory_space<vmem>>, %arg11: memref<64x32xf32, #tpu.memory_space<vmem>>, %arg12: memref<1x32xf32, #tpu.memory_space<vmem>>, %arg13: memref<3x1x32xf32, #tpu.memory_space<vmem>>, %arg14: memref<3x1x32xf32, #tpu.memory_space<vmem>>, %arg15: memref<2x8x32xf32, #tpu.memory_space<vmem>>) attributes {dimension_semantics = [], scalar_prefetch = 0 : i64, scratch_operands = 0 : i64, tpu.core_type = #tpu.core_type<tc>} {
    %c0 = arith.constant 0 : index
    %c0_0 = arith.constant 0 : index
    %c0_1 = arith.constant 0 : index
    %0 = vector.load %arg1[%c0, %c0_0, %c0_1] : memref<2x8x32xf32, #tpu.memory_space<vmem>>, vector<2x8x32xf32>
    %1 = vector.shape_cast %0 : vector<2x8x32xf32> to vector<16x32xf32>
    %c0_2 = arith.constant 0 : index
    %c0_3 = arith.constant 0 : index
    %c0_4 = arith.constant 0 : index
    %2 = vector.load %arg2[%c0_2, %c0_3, %c0_4] : memref<2x8x32xf32, #tpu.memory_space<vmem>>, vector<2x8x32xf32>
    %3 = vector.shape_cast %2 : vector<2x8x32xf32> to vector<16x32xf32>
    %4 = tpu.iota {dimensions = array<i32: 0>} : vector<8x8xi32>
    %5 = tpu.iota {dimensions = array<i32: 1>} : vector<8x8xi32>
    %6 = arith.cmpi sle, %5, %4 : vector<8x8xi32>
    %cst = arith.constant 0.000000e+00 : f32
    %cst_5 = arith.constant -1.000000e+06 : f32
    %7 = vector.broadcast %cst : f32 to vector<8x8xf32>
    %8 = vector.broadcast %cst_5 : f32 to vector<8x8xf32>
    %9 = arith.select %6, %7, %8 : vector<8x8xi1>, vector<8x8xf32>
    %10 = vector.shape_cast %9 : vector<8x8xf32> to vector<1x8x8xf32>
    %11 = tpu.iota {dimensions = array<i32: 2>} : vector<2x1x8xi32>
    %c0_6 = arith.constant 0 : index
    %c0_7 = arith.constant 0 : index
    %c0_8 = arith.constant 0 : index
    %12 = vector.load %arg0[%c0_6, %c0_7, %c0_8] : memref<2x1x1xi32, #tpu.memory_space<vmem>>, vector<2x1x1xi32>
    %13 = vector.broadcast %12 : vector<2x1x1xi32> to vector<2x1x8xi32>
    %14 = arith.cmpi slt, %11, %13 : vector<2x1x8xi32>
    %cst_9 = arith.constant 0.000000e+00 : f32
    %cst_10 = arith.constant -1.000000e+06 : f32
    %15 = vector.broadcast %cst_9 : f32 to vector<2x1x8xf32>
    %16 = vector.broadcast %cst_10 : f32 to vector<2x1x8xf32>
    %17 = arith.select %14, %15, %16 : vector<2x1x8xi1>, vector<2x1x8xf32>
    %18 = tpu.iota {dimensions = array<i32: 2>} : vector<1x1x32xi32>
    %c0_i32 = arith.constant 0 : i32
    %19 = vector.broadcast %c0_i32 : i32 to vector<1x1x32xi32>
    %20 = arith.cmpi sge, %18, %19 : vector<1x1x32xi32>
    %c8_i32 = arith.constant 8 : i32
    %21 = vector.broadcast %c8_i32 : i32 to vector<1x1x32xi32>
    %22 = arith.cmpi slt, %18, %21 : vector<1x1x32xi32>
    %23 = arith.andi %20, %22 : vector<1x1x32xi1>
    %cst_11 = arith.constant 1.000000e+00 : f32
    %cst_12 = arith.constant 0.000000e+00 : f32
    %24 = vector.broadcast %cst_11 : f32 to vector<1x1x32xf32>
    %25 = vector.broadcast %cst_12 : f32 to vector<1x1x32xf32>
    %26 = arith.select %23, %24, %25 : vector<1x1x32xi1>, vector<1x1x32xf32>
    %c8_i32_13 = arith.constant 8 : i32
    %27 = vector.broadcast %c8_i32_13 : i32 to vector<1x1x32xi32>
    %28 = arith.cmpi sge, %18, %27 : vector<1x1x32xi32>
    %c16_i32 = arith.constant 16 : i32
    %29 = vector.broadcast %c16_i32 : i32 to vector<1x1x32xi32>
    %30 = arith.cmpi slt, %18, %29 : vector<1x1x32xi32>
    %31 = arith.andi %28, %30 : vector<1x1x32xi1>
    %cst_14 = arith.constant 1.000000e+00 : f32
    %cst_15 = arith.constant 0.000000e+00 : f32
    %32 = vector.broadcast %cst_14 : f32 to vector<1x1x32xf32>
    %33 = vector.broadcast %cst_15 : f32 to vector<1x1x32xf32>
    %34 = arith.select %31, %32, %33 : vector<1x1x32xi1>, vector<1x1x32xf32>
    %c16_i32_16 = arith.constant 16 : i32
    %35 = vector.broadcast %c16_i32_16 : i32 to vector<1x1x32xi32>
    %36 = arith.cmpi sge, %18, %35 : vector<1x1x32xi32>
    %c24_i32 = arith.constant 24 : i32
    %37 = vector.broadcast %c24_i32 : i32 to vector<1x1x32xi32>
    %38 = arith.cmpi slt, %18, %37 : vector<1x1x32xi32>
    %39 = arith.andi %36, %38 : vector<1x1x32xi1>
    %cst_17 = arith.constant 1.000000e+00 : f32
    %cst_18 = arith.constant 0.000000e+00 : f32
    %40 = vector.broadcast %cst_17 : f32 to vector<1x1x32xf32>
    %41 = vector.broadcast %cst_18 : f32 to vector<1x1x32xf32>
    %42 = arith.select %39, %40, %41 : vector<1x1x32xi1>, vector<1x1x32xf32>
    %c24_i32_19 = arith.constant 24 : i32
    %43 = vector.broadcast %c24_i32_19 : i32 to vector<1x1x32xi32>
    %44 = arith.cmpi sge, %18, %43 : vector<1x1x32xi32>
    %c32_i32 = arith.constant 32 : i32
    %45 = vector.broadcast %c32_i32 : i32 to vector<1x1x32xi32>
    %46 = arith.cmpi slt, %18, %45 : vector<1x1x32xi32>
    %47 = arith.andi %44, %46 : vector<1x1x32xi1>
    %cst_20 = arith.constant 1.000000e+00 : f32
    %cst_21 = arith.constant 0.000000e+00 : f32
    %48 = vector.broadcast %cst_20 : f32 to vector<1x1x32xf32>
    %49 = vector.broadcast %cst_21 : f32 to vector<1x1x32xf32>
    %50 = arith.select %47, %48, %49 : vector<1x1x32xi1>, vector<1x1x32xf32>
    %c0_22 = arith.constant 0 : index
    %c0_23 = arith.constant 0 : index
    %51 = vector.load %arg3[%c0_22, %c0_23] : memref<32x32xf32, #tpu.memory_space<vmem>>, vector<32x32xf32>
    %c0_24 = arith.constant 0 : index
    %c0_25 = arith.constant 0 : index
    %52 = vector.load %arg4[%c0_24, %c0_25] : memref<32x64xf32, #tpu.memory_space<vmem>>, vector<32x64xf32>
    %c0_26 = arith.constant 0 : index
    %c0_27 = arith.constant 0 : index
    %53 = vector.load %arg5[%c0_26, %c0_27] : memref<32x32xf32, #tpu.memory_space<vmem>>, vector<32x32xf32>
    %cst_28 = arith.constant dense<0.000000e+00> : vector<16x32xf32>
    %54 = tpu.matmul %1, %51, %cst_28 {dimension_numbers = #tpu.dot_dimension_numbers<[1], [0], [0], [1], [0, 0, 1, 1], [], []>} : vector<16x32xf32>, vector<32x32xf32>, vector<16x32xf32> -> vector<16x32xf32>
    %55 = vector.shape_cast %54 : vector<16x32xf32> to vector<2x8x32xf32>
    %cst_29 = arith.constant dense<0.000000e+00> : vector<16x64xf32>
    %56 = tpu.matmul %1, %52, %cst_29 {dimension_numbers = #tpu.dot_dimension_numbers<[1], [0], [0], [1], [0, 0, 1, 1], [], []>} : vector<16x32xf32>, vector<32x64xf32>, vector<16x64xf32> -> vector<16x64xf32>
    %57 = vector.extract_strided_slice %56 {offsets = [0, 0], sizes = [16, 32], strides = [1, 1]} : vector<16x64xf32> to vector<16x32xf32>
    %58 = vector.shape_cast %57 : vector<16x32xf32> to vector<2x8x32xf32>
    %59 = vector.extract_strided_slice %56 {offsets = [0, 32], sizes = [16, 32], strides = [1, 1]} : vector<16x64xf32> to vector<16x32xf32>
    %60 = vector.shape_cast %59 : vector<16x32xf32> to vector<2x8x32xf32>
    %cst_30 = arith.constant 0.000000e+00 : f32
    %61 = vector.broadcast %cst_30 : f32 to vector<2x8x32xf32>
    %62 = vector.broadcast %26 : vector<1x1x32xf32> to vector<2x8x32xf32>
    %63 = arith.mulf %55, %62 : vector<2x8x32xf32>
    "tpu.trace_start"() <{level = 10 : i32, message = "bqd,bkd->bqk"}> : () -> ()
    %cst_31 = arith.constant dense<0.000000e+00> : vector<2x8x8xf32>
    %64 = tpu.matmul %63, %58, %cst_31 {dimension_numbers = #tpu.dot_dimension_numbers<[2], [2], [1], [1], [0, 0, 0, 1, 1, 1], [0], [0]>} : vector<2x8x32xf32>, vector<2x8x32xf32>, vector<2x8x8xf32> -> vector<2x8x8xf32>
    "tpu.trace_stop"() : () -> ()
    %65 = vector.broadcast %10 : vector<1x8x8xf32> to vector<2x8x8xf32>
    %66 = arith.addf %64, %65 : vector<2x8x8xf32>
    %cst_32 = arith.constant dense<0xFF800000> : vector<2x8xf32>
    %67 = vector.multi_reduction <maximumf>, %66, %cst_32 [2] : vector<2x8x8xf32> to vector<2x8xf32>
    %68 = vector.shape_cast %67 : vector<2x8xf32> to vector<2x8x1xf32>
    %69 = vector.broadcast %68 : vector<2x8x1xf32> to vector<2x8x8xf32>
    %70 = arith.subf %66, %69 : vector<2x8x8xf32>
    %71 = math.exp %70 : vector<2x8x8xf32>
    %cst_33 = arith.constant dense<0.000000e+00> : vector<2x8xf32>
    %72 = vector.multi_reduction <add>, %71, %cst_33 [2] : vector<2x8x8xf32> to vector<2x8xf32>
    %73 = vector.shape_cast %72 : vector<2x8xf32> to vector<2x8x1xf32>
    %74 = tpu.reciprocal %73 {approx = true} : vector<2x8x1xf32> -> vector<2x8x1xf32>
    %75 = vector.broadcast %74 : vector<2x8x1xf32> to vector<2x8x8xf32>
    %76 = arith.mulf %71, %75 : vector<2x8x8xf32>
    %77 = vector.broadcast %26 : vector<1x1x32xf32> to vector<2x8x32xf32>
    %78 = arith.mulf %60, %77 : vector<2x8x32xf32>
    "tpu.trace_start"() <{level = 10 : i32, message = "bqk,bkd->bqd"}> : () -> ()
    %cst_34 = arith.constant dense<0.000000e+00> : vector<2x8x32xf32>
    %79 = tpu.matmul %76, %78, %cst_34 {dimension_numbers = #tpu.dot_dimension_numbers<[2], [1], [1], [2], [0, 0, 0, 1, 1, 2], [0], [0]>} : vector<2x8x8xf32>, vector<2x8x32xf32>, vector<2x8x32xf32> -> vector<2x8x32xf32>
    "tpu.trace_stop"() : () -> ()
    %80 = arith.addf %61, %79 : vector<2x8x32xf32>
    %81 = vector.broadcast %34 : vector<1x1x32xf32> to vector<2x8x32xf32>
    %82 = arith.mulf %55, %81 : vector<2x8x32xf32>
    "tpu.trace_start"() <{level = 10 : i32, message = "bqd,bkd->bqk"}> : () -> ()
    %cst_35 = arith.constant dense<0.000000e+00> : vector<2x8x8xf32>
    %83 = tpu.matmul %82, %58, %cst_35 {dimension_numbers = #tpu.dot_dimension_numbers<[2], [2], [1], [1], [0, 0, 0, 1, 1, 1], [0], [0]>} : vector<2x8x32xf32>, vector<2x8x32xf32>, vector<2x8x8xf32> -> vector<2x8x8xf32>
    "tpu.trace_stop"() : () -> ()
    %84 = vector.broadcast %10 : vector<1x8x8xf32> to vector<2x8x8xf32>
    %85 = arith.addf %83, %84 : vector<2x8x8xf32>
    %cst_36 = arith.constant dense<0xFF800000> : vector<2x8xf32>
    %86 = vector.multi_reduction <maximumf>, %85, %cst_36 [2] : vector<2x8x8xf32> to vector<2x8xf32>
    %87 = vector.shape_cast %86 : vector<2x8xf32> to vector<2x8x1xf32>
    %88 = vector.broadcast %87 : vector<2x8x1xf32> to vector<2x8x8xf32>
    %89 = arith.subf %85, %88 : vector<2x8x8xf32>
    %90 = math.exp %89 : vector<2x8x8xf32>
    %cst_37 = arith.constant dense<0.000000e+00> : vector<2x8xf32>
    %91 = vector.multi_reduction <add>, %90, %cst_37 [2] : vector<2x8x8xf32> to vector<2x8xf32>
    %92 = vector.shape_cast %91 : vector<2x8xf32> to vector<2x8x1xf32>
    %93 = tpu.reciprocal %92 {approx = true} : vector<2x8x1xf32> -> vector<2x8x1xf32>
    %94 = vector.broadcast %93 : vector<2x8x1xf32> to vector<2x8x8xf32>
    %95 = arith.mulf %90, %94 : vector<2x8x8xf32>
    %96 = vector.broadcast %34 : vector<1x1x32xf32> to vector<2x8x32xf32>
    %97 = arith.mulf %60, %96 : vector<2x8x32xf32>
    "tpu.trace_start"() <{level = 10 : i32, message = "bqk,bkd->bqd"}> : () -> ()
    %cst_38 = arith.constant dense<0.000000e+00> : vector<2x8x32xf32>
    %98 = tpu.matmul %95, %97, %cst_38 {dimension_numbers = #tpu.dot_dimension_numbers<[2], [1], [1], [2], [0, 0, 0, 1, 1, 2], [0], [0]>} : vector<2x8x8xf32>, vector<2x8x32xf32>, vector<2x8x32xf32> -> vector<2x8x32xf32>
    "tpu.trace_stop"() : () -> ()
    %99 = arith.addf %80, %98 : vector<2x8x32xf32>
    %100 = vector.broadcast %42 : vector<1x1x32xf32> to vector<2x8x32xf32>
    %101 = arith.mulf %55, %100 : vector<2x8x32xf32>
    "tpu.trace_start"() <{level = 10 : i32, message = "bqd,bkd->bqk"}> : () -> ()
    %cst_39 = arith.constant dense<0.000000e+00> : vector<2x8x8xf32>
    %102 = tpu.matmul %101, %58, %cst_39 {dimension_numbers = #tpu.dot_dimension_numbers<[2], [2], [1], [1], [0, 0, 0, 1, 1, 1], [0], [0]>} : vector<2x8x32xf32>, vector<2x8x32xf32>, vector<2x8x8xf32> -> vector<2x8x8xf32>
    "tpu.trace_stop"() : () -> ()
    %103 = vector.broadcast %10 : vector<1x8x8xf32> to vector<2x8x8xf32>
    %104 = arith.addf %102, %103 : vector<2x8x8xf32>
    %cst_40 = arith.constant dense<0xFF800000> : vector<2x8xf32>
    %105 = vector.multi_reduction <maximumf>, %104, %cst_40 [2] : vector<2x8x8xf32> to vector<2x8xf32>
    %106 = vector.shape_cast %105 : vector<2x8xf32> to vector<2x8x1xf32>
    %107 = vector.broadcast %106 : vector<2x8x1xf32> to vector<2x8x8xf32>
    %108 = arith.subf %104, %107 : vector<2x8x8xf32>
    %109 = math.exp %108 : vector<2x8x8xf32>
    %cst_41 = arith.constant dense<0.000000e+00> : vector<2x8xf32>
    %110 = vector.multi_reduction <add>, %109, %cst_41 [2] : vector<2x8x8xf32> to vector<2x8xf32>
    %111 = vector.shape_cast %110 : vector<2x8xf32> to vector<2x8x1xf32>
    %112 = tpu.reciprocal %111 {approx = true} : vector<2x8x1xf32> -> vector<2x8x1xf32>
    %113 = vector.broadcast %112 : vector<2x8x1xf32> to vector<2x8x8xf32>
    %114 = arith.mulf %109, %113 : vector<2x8x8xf32>
    %115 = vector.broadcast %42 : vector<1x1x32xf32> to vector<2x8x32xf32>
    %116 = arith.mulf %60, %115 : vector<2x8x32xf32>
    "tpu.trace_start"() <{level = 10 : i32, message = "bqk,bkd->bqd"}> : () -> ()
    %cst_42 = arith.constant dense<0.000000e+00> : vector<2x8x32xf32>
    %117 = tpu.matmul %114, %116, %cst_42 {dimension_numbers = #tpu.dot_dimension_numbers<[2], [1], [1], [2], [0, 0, 0, 1, 1, 2], [0], [0]>} : vector<2x8x8xf32>, vector<2x8x32xf32>, vector<2x8x32xf32> -> vector<2x8x32xf32>
    "tpu.trace_stop"() : () -> ()
    %118 = arith.addf %99, %117 : vector<2x8x32xf32>
    %119 = vector.broadcast %50 : vector<1x1x32xf32> to vector<2x8x32xf32>
    %120 = arith.mulf %55, %119 : vector<2x8x32xf32>
    "tpu.trace_start"() <{level = 10 : i32, message = "bqd,bkd->bqk"}> : () -> ()
    %cst_43 = arith.constant dense<0.000000e+00> : vector<2x8x8xf32>
    %121 = tpu.matmul %120, %58, %cst_43 {dimension_numbers = #tpu.dot_dimension_numbers<[2], [2], [1], [1], [0, 0, 0, 1, 1, 1], [0], [0]>} : vector<2x8x32xf32>, vector<2x8x32xf32>, vector<2x8x8xf32> -> vector<2x8x8xf32>
    "tpu.trace_stop"() : () -> ()
    %122 = vector.broadcast %10 : vector<1x8x8xf32> to vector<2x8x8xf32>
    %123 = arith.addf %121, %122 : vector<2x8x8xf32>
    %cst_44 = arith.constant dense<0xFF800000> : vector<2x8xf32>
    %124 = vector.multi_reduction <maximumf>, %123, %cst_44 [2] : vector<2x8x8xf32> to vector<2x8xf32>
    %125 = vector.shape_cast %124 : vector<2x8xf32> to vector<2x8x1xf32>
    %126 = vector.broadcast %125 : vector<2x8x1xf32> to vector<2x8x8xf32>
    %127 = arith.subf %123, %126 : vector<2x8x8xf32>
    %128 = math.exp %127 : vector<2x8x8xf32>
    %cst_45 = arith.constant dense<0.000000e+00> : vector<2x8xf32>
    %129 = vector.multi_reduction <add>, %128, %cst_45 [2] : vector<2x8x8xf32> to vector<2x8xf32>
    %130 = vector.shape_cast %129 : vector<2x8xf32> to vector<2x8x1xf32>
    %131 = tpu.reciprocal %130 {approx = true} : vector<2x8x1xf32> -> vector<2x8x1xf32>
    %132 = vector.broadcast %131 : vector<2x8x1xf32> to vector<2x8x8xf32>
    %133 = arith.mulf %128, %132 : vector<2x8x8xf32>
    %134 = vector.broadcast %50 : vector<1x1x32xf32> to vector<2x8x32xf32>
    %135 = arith.mulf %60, %134 : vector<2x8x32xf32>
    "tpu.trace_start"() <{level = 10 : i32, message = "bqk,bkd->bqd"}> : () -> ()
    %cst_46 = arith.constant dense<0.000000e+00> : vector<2x8x32xf32>
    %136 = tpu.matmul %133, %135, %cst_46 {dimension_numbers = #tpu.dot_dimension_numbers<[2], [1], [1], [2], [0, 0, 0, 1, 1, 2], [0], [0]>} : vector<2x8x8xf32>, vector<2x8x32xf32>, vector<2x8x32xf32> -> vector<2x8x32xf32>
    "tpu.trace_stop"() : () -> ()
    %137 = arith.addf %118, %136 : vector<2x8x32xf32>
    %138 = vector.shape_cast %137 : vector<2x8x32xf32> to vector<16x32xf32>
    %cst_47 = arith.constant dense<0.000000e+00> : vector<16x32xf32>
    %139 = tpu.matmul %138, %53, %cst_47 {dimension_numbers = #tpu.dot_dimension_numbers<[1], [0], [0], [1], [0, 0, 1, 1], [], []>} : vector<16x32xf32>, vector<32x32xf32>, vector<16x32xf32> -> vector<16x32xf32>
    %140 = arith.addf %1, %139 : vector<16x32xf32>
    %c0_48 = arith.constant 0 : index
    %c0_49 = arith.constant 0 : index
    %c0_50 = arith.constant 0 : index
    %141 = vector.load %arg13[%c0_48, %c0_49, %c0_50] : memref<3x1x32xf32, #tpu.memory_space<vmem>>, vector<1x1x32xf32>
    %142 = vector.shape_cast %141 : vector<1x1x32xf32> to vector<1x32xf32>
    %c0_51 = arith.constant 0 : index
    %c0_52 = arith.constant 0 : index
    %c0_53 = arith.constant 0 : index
    %143 = vector.load %arg14[%c0_51, %c0_52, %c0_53] : memref<3x1x32xf32, #tpu.memory_space<vmem>>, vector<1x1x32xf32>
    %144 = vector.shape_cast %143 : vector<1x1x32xf32> to vector<1x32xf32>
    %cst_54 = arith.constant dense<0.000000e+00> : vector<16xf32>
    %145 = vector.multi_reduction <add>, %140, %cst_54 [1] : vector<16x32xf32> to vector<16xf32>
    %146 = vector.shape_cast %145 : vector<16xf32> to vector<16x1xf32>
    %cst_55 = arith.constant 3.200000e+01 : f32
    %147 = vector.broadcast %cst_55 : f32 to vector<16x1xf32>
    %148 = arith.divf %146, %147 : vector<16x1xf32>
    %149 = vector.broadcast %148 : vector<16x1xf32> to vector<16x32xf32>
    %150 = arith.subf %140, %149 : vector<16x32xf32>
    %151 = arith.mulf %150, %150 : vector<16x32xf32>
    %cst_56 = arith.constant dense<0.000000e+00> : vector<16xf32>
    %152 = vector.multi_reduction <add>, %151, %cst_56 [1] : vector<16x32xf32> to vector<16xf32>
    %153 = vector.shape_cast %152 : vector<16xf32> to vector<16x1xf32>
    %cst_57 = arith.constant 3.200000e+01 : f32
    %154 = vector.broadcast %cst_57 : f32 to vector<16x1xf32>
    %155 = arith.divf %153, %154 : vector<16x1xf32>
    %156 = vector.broadcast %148 : vector<16x1xf32> to vector<16x32xf32>
    %157 = arith.subf %140, %156 : vector<16x32xf32>
    %cst_58 = arith.constant 9.99999974E-6 : f32
    %158 = vector.broadcast %cst_58 : f32 to vector<16x1xf32>
    %159 = arith.addf %155, %158 : vector<16x1xf32>
    %160 = math.rsqrt %159 : vector<16x1xf32>
    %161 = vector.broadcast %160 : vector<16x1xf32> to vector<16x32xf32>
    %162 = arith.mulf %157, %161 : vector<16x32xf32>
    %163 = vector.broadcast %142 : vector<1x32xf32> to vector<16x32xf32>
    %164 = arith.mulf %162, %163 : vector<16x32xf32>
    %165 = vector.broadcast %144 : vector<1x32xf32> to vector<16x32xf32>
    %166 = arith.addf %164, %165 : vector<16x32xf32>
    %c0_59 = arith.constant 0 : index
    %c0_60 = arith.constant 0 : index
    %167 = vector.load %arg6[%c0_59, %c0_60] : memref<32x32xf32, #tpu.memory_space<vmem>>, vector<32x32xf32>
    %c0_61 = arith.constant 0 : index
    %c0_62 = arith.constant 0 : index
    %168 = vector.load %arg7[%c0_61, %c0_62] : memref<32x64xf32, #tpu.memory_space<vmem>>, vector<32x64xf32>
    %c0_63 = arith.constant 0 : index
    %c0_64 = arith.constant 0 : index
    %169 = vector.load %arg8[%c0_63, %c0_64] : memref<32x32xf32, #tpu.memory_space<vmem>>, vector<32x32xf32>
    %cst_65 = arith.constant dense<0.000000e+00> : vector<16x32xf32>
    %170 = tpu.matmul %166, %167, %cst_65 {dimension_numbers = #tpu.dot_dimension_numbers<[1], [0], [0], [1], [0, 0, 1, 1], [], []>} : vector<16x32xf32>, vector<32x32xf32>, vector<16x32xf32> -> vector<16x32xf32>
    %171 = vector.shape_cast %170 : vector<16x32xf32> to vector<2x8x32xf32>
    %cst_66 = arith.constant dense<0.000000e+00> : vector<16x64xf32>
    %172 = tpu.matmul %3, %168, %cst_66 {dimension_numbers = #tpu.dot_dimension_numbers<[1], [0], [0], [1], [0, 0, 1, 1], [], []>} : vector<16x32xf32>, vector<32x64xf32>, vector<16x64xf32> -> vector<16x64xf32>
    %173 = vector.extract_strided_slice %172 {offsets = [0, 0], sizes = [16, 32], strides = [1, 1]} : vector<16x64xf32> to vector<16x32xf32>
    %174 = vector.shape_cast %173 : vector<16x32xf32> to vector<2x8x32xf32>
    %175 = vector.extract_strided_slice %172 {offsets = [0, 32], sizes = [16, 32], strides = [1, 1]} : vector<16x64xf32> to vector<16x32xf32>
    %176 = vector.shape_cast %175 : vector<16x32xf32> to vector<2x8x32xf32>
    %cst_67 = arith.constant 0.000000e+00 : f32
    %177 = vector.broadcast %cst_67 : f32 to vector<2x8x32xf32>
    %178 = vector.broadcast %26 : vector<1x1x32xf32> to vector<2x8x32xf32>
    %179 = arith.mulf %171, %178 : vector<2x8x32xf32>
    "tpu.trace_start"() <{level = 10 : i32, message = "bqd,bkd->bqk"}> : () -> ()
    %cst_68 = arith.constant dense<0.000000e+00> : vector<2x8x8xf32>
    %180 = tpu.matmul %179, %174, %cst_68 {dimension_numbers = #tpu.dot_dimension_numbers<[2], [2], [1], [1], [0, 0, 0, 1, 1, 1], [0], [0]>} : vector<2x8x32xf32>, vector<2x8x32xf32>, vector<2x8x8xf32> -> vector<2x8x8xf32>
    "tpu.trace_stop"() : () -> ()
    %181 = vector.broadcast %17 : vector<2x1x8xf32> to vector<2x8x8xf32>
    %182 = arith.addf %180, %181 : vector<2x8x8xf32>
    %cst_69 = arith.constant dense<0xFF800000> : vector<2x8xf32>
    %183 = vector.multi_reduction <maximumf>, %182, %cst_69 [2] : vector<2x8x8xf32> to vector<2x8xf32>
    %184 = vector.shape_cast %183 : vector<2x8xf32> to vector<2x8x1xf32>
    %185 = vector.broadcast %184 : vector<2x8x1xf32> to vector<2x8x8xf32>
    %186 = arith.subf %182, %185 : vector<2x8x8xf32>
    %187 = math.exp %186 : vector<2x8x8xf32>
    %cst_70 = arith.constant dense<0.000000e+00> : vector<2x8xf32>
    %188 = vector.multi_reduction <add>, %187, %cst_70 [2] : vector<2x8x8xf32> to vector<2x8xf32>
    %189 = vector.shape_cast %188 : vector<2x8xf32> to vector<2x8x1xf32>
    %190 = tpu.reciprocal %189 {approx = true} : vector<2x8x1xf32> -> vector<2x8x1xf32>
    %191 = vector.broadcast %190 : vector<2x8x1xf32> to vector<2x8x8xf32>
    %192 = arith.mulf %187, %191 : vector<2x8x8xf32>
    %193 = vector.broadcast %26 : vector<1x1x32xf32> to vector<2x8x32xf32>
    %194 = arith.mulf %176, %193 : vector<2x8x32xf32>
    "tpu.trace_start"() <{level = 10 : i32, message = "bqk,bkd->bqd"}> : () -> ()
    %cst_71 = arith.constant dense<0.000000e+00> : vector<2x8x32xf32>
    %195 = tpu.matmul %192, %194, %cst_71 {dimension_numbers = #tpu.dot_dimension_numbers<[2], [1], [1], [2], [0, 0, 0, 1, 1, 2], [0], [0]>} : vector<2x8x8xf32>, vector<2x8x32xf32>, vector<2x8x32xf32> -> vector<2x8x32xf32>
    "tpu.trace_stop"() : () -> ()
    %196 = arith.addf %177, %195 : vector<2x8x32xf32>
    %197 = vector.broadcast %34 : vector<1x1x32xf32> to vector<2x8x32xf32>
    %198 = arith.mulf %171, %197 : vector<2x8x32xf32>
    "tpu.trace_start"() <{level = 10 : i32, message = "bqd,bkd->bqk"}> : () -> ()
    %cst_72 = arith.constant dense<0.000000e+00> : vector<2x8x8xf32>
    %199 = tpu.matmul %198, %174, %cst_72 {dimension_numbers = #tpu.dot_dimension_numbers<[2], [2], [1], [1], [0, 0, 0, 1, 1, 1], [0], [0]>} : vector<2x8x32xf32>, vector<2x8x32xf32>, vector<2x8x8xf32> -> vector<2x8x8xf32>
    "tpu.trace_stop"() : () -> ()
    %200 = vector.broadcast %17 : vector<2x1x8xf32> to vector<2x8x8xf32>
    %201 = arith.addf %199, %200 : vector<2x8x8xf32>
    %cst_73 = arith.constant dense<0xFF800000> : vector<2x8xf32>
    %202 = vector.multi_reduction <maximumf>, %201, %cst_73 [2] : vector<2x8x8xf32> to vector<2x8xf32>
    %203 = vector.shape_cast %202 : vector<2x8xf32> to vector<2x8x1xf32>
    %204 = vector.broadcast %203 : vector<2x8x1xf32> to vector<2x8x8xf32>
    %205 = arith.subf %201, %204 : vector<2x8x8xf32>
    %206 = math.exp %205 : vector<2x8x8xf32>
    %cst_74 = arith.constant dense<0.000000e+00> : vector<2x8xf32>
    %207 = vector.multi_reduction <add>, %206, %cst_74 [2] : vector<2x8x8xf32> to vector<2x8xf32>
    %208 = vector.shape_cast %207 : vector<2x8xf32> to vector<2x8x1xf32>
    %209 = tpu.reciprocal %208 {approx = true} : vector<2x8x1xf32> -> vector<2x8x1xf32>
    %210 = vector.broadcast %209 : vector<2x8x1xf32> to vector<2x8x8xf32>
    %211 = arith.mulf %206, %210 : vector<2x8x8xf32>
    %212 = vector.broadcast %34 : vector<1x1x32xf32> to vector<2x8x32xf32>
    %213 = arith.mulf %176, %212 : vector<2x8x32xf32>
    "tpu.trace_start"() <{level = 10 : i32, message = "bqk,bkd->bqd"}> : () -> ()
    %cst_75 = arith.constant dense<0.000000e+00> : vector<2x8x32xf32>
    %214 = tpu.matmul %211, %213, %cst_75 {dimension_numbers = #tpu.dot_dimension_numbers<[2], [1], [1], [2], [0, 0, 0, 1, 1, 2], [0], [0]>} : vector<2x8x8xf32>, vector<2x8x32xf32>, vector<2x8x32xf32> -> vector<2x8x32xf32>
    "tpu.trace_stop"() : () -> ()
    %215 = arith.addf %196, %214 : vector<2x8x32xf32>
    %216 = vector.broadcast %42 : vector<1x1x32xf32> to vector<2x8x32xf32>
    %217 = arith.mulf %171, %216 : vector<2x8x32xf32>
    "tpu.trace_start"() <{level = 10 : i32, message = "bqd,bkd->bqk"}> : () -> ()
    %cst_76 = arith.constant dense<0.000000e+00> : vector<2x8x8xf32>
    %218 = tpu.matmul %217, %174, %cst_76 {dimension_numbers = #tpu.dot_dimension_numbers<[2], [2], [1], [1], [0, 0, 0, 1, 1, 1], [0], [0]>} : vector<2x8x32xf32>, vector<2x8x32xf32>, vector<2x8x8xf32> -> vector<2x8x8xf32>
    "tpu.trace_stop"() : () -> ()
    %219 = vector.broadcast %17 : vector<2x1x8xf32> to vector<2x8x8xf32>
    %220 = arith.addf %218, %219 : vector<2x8x8xf32>
    %cst_77 = arith.constant dense<0xFF800000> : vector<2x8xf32>
    %221 = vector.multi_reduction <maximumf>, %220, %cst_77 [2] : vector<2x8x8xf32> to vector<2x8xf32>
    %222 = vector.shape_cast %221 : vector<2x8xf32> to vector<2x8x1xf32>
    %223 = vector.broadcast %222 : vector<2x8x1xf32> to vector<2x8x8xf32>
    %224 = arith.subf %220, %223 : vector<2x8x8xf32>
    %225 = math.exp %224 : vector<2x8x8xf32>
    %cst_78 = arith.constant dense<0.000000e+00> : vector<2x8xf32>
    %226 = vector.multi_reduction <add>, %225, %cst_78 [2] : vector<2x8x8xf32> to vector<2x8xf32>
    %227 = vector.shape_cast %226 : vector<2x8xf32> to vector<2x8x1xf32>
    %228 = tpu.reciprocal %227 {approx = true} : vector<2x8x1xf32> -> vector<2x8x1xf32>
    %229 = vector.broadcast %228 : vector<2x8x1xf32> to vector<2x8x8xf32>
    %230 = arith.mulf %225, %229 : vector<2x8x8xf32>
    %231 = vector.broadcast %42 : vector<1x1x32xf32> to vector<2x8x32xf32>
    %232 = arith.mulf %176, %231 : vector<2x8x32xf32>
    "tpu.trace_start"() <{level = 10 : i32, message = "bqk,bkd->bqd"}> : () -> ()
    %cst_79 = arith.constant dense<0.000000e+00> : vector<2x8x32xf32>
    %233 = tpu.matmul %230, %232, %cst_79 {dimension_numbers = #tpu.dot_dimension_numbers<[2], [1], [1], [2], [0, 0, 0, 1, 1, 2], [0], [0]>} : vector<2x8x8xf32>, vector<2x8x32xf32>, vector<2x8x32xf32> -> vector<2x8x32xf32>
    "tpu.trace_stop"() : () -> ()
    %234 = arith.addf %215, %233 : vector<2x8x32xf32>
    %235 = vector.broadcast %50 : vector<1x1x32xf32> to vector<2x8x32xf32>
    %236 = arith.mulf %171, %235 : vector<2x8x32xf32>
    "tpu.trace_start"() <{level = 10 : i32, message = "bqd,bkd->bqk"}> : () -> ()
    %cst_80 = arith.constant dense<0.000000e+00> : vector<2x8x8xf32>
    %237 = tpu.matmul %236, %174, %cst_80 {dimension_numbers = #tpu.dot_dimension_numbers<[2], [2], [1], [1], [0, 0, 0, 1, 1, 1], [0], [0]>} : vector<2x8x32xf32>, vector<2x8x32xf32>, vector<2x8x8xf32> -> vector<2x8x8xf32>
    "tpu.trace_stop"() : () -> ()
    %238 = vector.broadcast %17 : vector<2x1x8xf32> to vector<2x8x8xf32>
    %239 = arith.addf %237, %238 : vector<2x8x8xf32>
    %cst_81 = arith.constant dense<0xFF800000> : vector<2x8xf32>
    %240 = vector.multi_reduction <maximumf>, %239, %cst_81 [2] : vector<2x8x8xf32> to vector<2x8xf32>
    %241 = vector.shape_cast %240 : vector<2x8xf32> to vector<2x8x1xf32>
    %242 = vector.broadcast %241 : vector<2x8x1xf32> to vector<2x8x8xf32>
    %243 = arith.subf %239, %242 : vector<2x8x8xf32>
    %244 = math.exp %243 : vector<2x8x8xf32>
    %cst_82 = arith.constant dense<0.000000e+00> : vector<2x8xf32>
    %245 = vector.multi_reduction <add>, %244, %cst_82 [2] : vector<2x8x8xf32> to vector<2x8xf32>
    %246 = vector.shape_cast %245 : vector<2x8xf32> to vector<2x8x1xf32>
    %247 = tpu.reciprocal %246 {approx = true} : vector<2x8x1xf32> -> vector<2x8x1xf32>
    %248 = vector.broadcast %247 : vector<2x8x1xf32> to vector<2x8x8xf32>
    %249 = arith.mulf %244, %248 : vector<2x8x8xf32>
    %250 = vector.broadcast %50 : vector<1x1x32xf32> to vector<2x8x32xf32>
    %251 = arith.mulf %176, %250 : vector<2x8x32xf32>
    "tpu.trace_start"() <{level = 10 : i32, message = "bqk,bkd->bqd"}> : () -> ()
    %cst_83 = arith.constant dense<0.000000e+00> : vector<2x8x32xf32>
    %252 = tpu.matmul %249, %251, %cst_83 {dimension_numbers = #tpu.dot_dimension_numbers<[2], [1], [1], [2], [0, 0, 0, 1, 1, 2], [0], [0]>} : vector<2x8x8xf32>, vector<2x8x32xf32>, vector<2x8x32xf32> -> vector<2x8x32xf32>
    "tpu.trace_stop"() : () -> ()
    %253 = arith.addf %234, %252 : vector<2x8x32xf32>
    %254 = vector.shape_cast %253 : vector<2x8x32xf32> to vector<16x32xf32>
    %cst_84 = arith.constant dense<0.000000e+00> : vector<16x32xf32>
    %255 = tpu.matmul %254, %169, %cst_84 {dimension_numbers = #tpu.dot_dimension_numbers<[1], [0], [0], [1], [0, 0, 1, 1], [], []>} : vector<16x32xf32>, vector<32x32xf32>, vector<16x32xf32> -> vector<16x32xf32>
    %256 = arith.addf %166, %255 : vector<16x32xf32>
    %c1 = arith.constant 1 : index
    %c0_85 = arith.constant 0 : index
    %c0_86 = arith.constant 0 : index
    %257 = vector.load %arg13[%c1, %c0_85, %c0_86] : memref<3x1x32xf32, #tpu.memory_space<vmem>>, vector<1x1x32xf32>
    %258 = vector.shape_cast %257 : vector<1x1x32xf32> to vector<1x32xf32>
    %c1_87 = arith.constant 1 : index
    %c0_88 = arith.constant 0 : index
    %c0_89 = arith.constant 0 : index
    %259 = vector.load %arg14[%c1_87, %c0_88, %c0_89] : memref<3x1x32xf32, #tpu.memory_space<vmem>>, vector<1x1x32xf32>
    %260 = vector.shape_cast %259 : vector<1x1x32xf32> to vector<1x32xf32>
    %cst_90 = arith.constant dense<0.000000e+00> : vector<16xf32>
    %261 = vector.multi_reduction <add>, %256, %cst_90 [1] : vector<16x32xf32> to vector<16xf32>
    %262 = vector.shape_cast %261 : vector<16xf32> to vector<16x1xf32>
    %cst_91 = arith.constant 3.200000e+01 : f32
    %263 = vector.broadcast %cst_91 : f32 to vector<16x1xf32>
    %264 = arith.divf %262, %263 : vector<16x1xf32>
    %265 = vector.broadcast %264 : vector<16x1xf32> to vector<16x32xf32>
    %266 = arith.subf %256, %265 : vector<16x32xf32>
    %267 = arith.mulf %266, %266 : vector<16x32xf32>
    %cst_92 = arith.constant dense<0.000000e+00> : vector<16xf32>
    %268 = vector.multi_reduction <add>, %267, %cst_92 [1] : vector<16x32xf32> to vector<16xf32>
    %269 = vector.shape_cast %268 : vector<16xf32> to vector<16x1xf32>
    %cst_93 = arith.constant 3.200000e+01 : f32
    %270 = vector.broadcast %cst_93 : f32 to vector<16x1xf32>
    %271 = arith.divf %269, %270 : vector<16x1xf32>
    %272 = vector.broadcast %264 : vector<16x1xf32> to vector<16x32xf32>
    %273 = arith.subf %256, %272 : vector<16x32xf32>
    %cst_94 = arith.constant 9.99999974E-6 : f32
    %274 = vector.broadcast %cst_94 : f32 to vector<16x1xf32>
    %275 = arith.addf %271, %274 : vector<16x1xf32>
    %276 = math.rsqrt %275 : vector<16x1xf32>
    %277 = vector.broadcast %276 : vector<16x1xf32> to vector<16x32xf32>
    %278 = arith.mulf %273, %277 : vector<16x32xf32>
    %279 = vector.broadcast %258 : vector<1x32xf32> to vector<16x32xf32>
    %280 = arith.mulf %278, %279 : vector<16x32xf32>
    %281 = vector.broadcast %260 : vector<1x32xf32> to vector<16x32xf32>
    %282 = arith.addf %280, %281 : vector<16x32xf32>
    %c0_95 = arith.constant 0 : index
    %c0_96 = arith.constant 0 : index
    %283 = vector.load %arg9[%c0_95, %c0_96] : memref<32x64xf32, #tpu.memory_space<vmem>>, vector<32x64xf32>
    %cst_97 = arith.constant dense<0.000000e+00> : vector<16x64xf32>
    %284 = tpu.matmul %282, %283, %cst_97 {dimension_numbers = #tpu.dot_dimension_numbers<[1], [0], [0], [1], [0, 0, 1, 1], [], []>} : vector<16x32xf32>, vector<32x64xf32>, vector<16x64xf32> -> vector<16x64xf32>
    %c0_98 = arith.constant 0 : index
    %c0_99 = arith.constant 0 : index
    %285 = vector.load %arg10[%c0_98, %c0_99] : memref<1x64xf32, #tpu.memory_space<vmem>>, vector<1x64xf32>
    %286 = vector.broadcast %285 : vector<1x64xf32> to vector<16x64xf32>
    %287 = arith.addf %284, %286 : vector<16x64xf32>
    %cst_100 = arith.constant 0.000000e+00 : f32
    %288 = vector.broadcast %cst_100 : f32 to vector<16x64xf32>
    %289 = arith.maximumf %287, %288 : vector<16x64xf32>
    %c0_101 = arith.constant 0 : index
    %c0_102 = arith.constant 0 : index
    %290 = vector.load %arg11[%c0_101, %c0_102] : memref<64x32xf32, #tpu.memory_space<vmem>>, vector<64x32xf32>
    %cst_103 = arith.constant dense<0.000000e+00> : vector<16x32xf32>
    %291 = tpu.matmul %289, %290, %cst_103 {dimension_numbers = #tpu.dot_dimension_numbers<[1], [0], [0], [1], [0, 0, 1, 1], [], []>} : vector<16x64xf32>, vector<64x32xf32>, vector<16x32xf32> -> vector<16x32xf32>
    %c0_104 = arith.constant 0 : index
    %c0_105 = arith.constant 0 : index
    %292 = vector.load %arg12[%c0_104, %c0_105] : memref<1x32xf32, #tpu.memory_space<vmem>>, vector<1x32xf32>
    %293 = vector.broadcast %292 : vector<1x32xf32> to vector<16x32xf32>
    %294 = arith.addf %291, %293 : vector<16x32xf32>
    %295 = arith.addf %282, %294 : vector<16x32xf32>
    %c2 = arith.constant 2 : index
    %c0_106 = arith.constant 0 : index
    %c0_107 = arith.constant 0 : index
    %296 = vector.load %arg13[%c2, %c0_106, %c0_107] : memref<3x1x32xf32, #tpu.memory_space<vmem>>, vector<1x1x32xf32>
    %297 = vector.shape_cast %296 : vector<1x1x32xf32> to vector<1x32xf32>
    %c2_108 = arith.constant 2 : index
    %c0_109 = arith.constant 0 : index
    %c0_110 = arith.constant 0 : index
    %298 = vector.load %arg14[%c2_108, %c0_109, %c0_110] : memref<3x1x32xf32, #tpu.memory_space<vmem>>, vector<1x1x32xf32>
    %299 = vector.shape_cast %298 : vector<1x1x32xf32> to vector<1x32xf32>
    %cst_111 = arith.constant dense<0.000000e+00> : vector<16xf32>
    %300 = vector.multi_reduction <add>, %295, %cst_111 [1] : vector<16x32xf32> to vector<16xf32>
    %301 = vector.shape_cast %300 : vector<16xf32> to vector<16x1xf32>
    %cst_112 = arith.constant 3.200000e+01 : f32
    %302 = vector.broadcast %cst_112 : f32 to vector<16x1xf32>
    %303 = arith.divf %301, %302 : vector<16x1xf32>
    %304 = vector.broadcast %303 : vector<16x1xf32> to vector<16x32xf32>
    %305 = arith.subf %295, %304 : vector<16x32xf32>
    %306 = arith.mulf %305, %305 : vector<16x32xf32>
    %cst_113 = arith.constant dense<0.000000e+00> : vector<16xf32>
    %307 = vector.multi_reduction <add>, %306, %cst_113 [1] : vector<16x32xf32> to vector<16xf32>
    %308 = vector.shape_cast %307 : vector<16xf32> to vector<16x1xf32>
    %cst_114 = arith.constant 3.200000e+01 : f32
    %309 = vector.broadcast %cst_114 : f32 to vector<16x1xf32>
    %310 = arith.divf %308, %309 : vector<16x1xf32>
    %311 = vector.broadcast %303 : vector<16x1xf32> to vector<16x32xf32>
    %312 = arith.subf %295, %311 : vector<16x32xf32>
    %cst_115 = arith.constant 9.99999974E-6 : f32
    %313 = vector.broadcast %cst_115 : f32 to vector<16x1xf32>
    %314 = arith.addf %310, %313 : vector<16x1xf32>
    %315 = math.rsqrt %314 : vector<16x1xf32>
    %316 = vector.broadcast %315 : vector<16x1xf32> to vector<16x32xf32>
    %317 = arith.mulf %312, %316 : vector<16x32xf32>
    %318 = vector.broadcast %297 : vector<1x32xf32> to vector<16x32xf32>
    %319 = arith.mulf %317, %318 : vector<16x32xf32>
    %320 = vector.broadcast %299 : vector<1x32xf32> to vector<16x32xf32>
    %321 = arith.addf %319, %320 : vector<16x32xf32>
    %322 = vector.shape_cast %321 : vector<16x32xf32> to vector<2x8x32xf32>
    %c0_116 = arith.constant 0 : index
    %c0_117 = arith.constant 0 : index
    %c0_118 = arith.constant 0 : index
    %323 = vector.load %arg15[%c0_116, %c0_117, %c0_118] : memref<2x8x32xf32, #tpu.memory_space<vmem>>, vector<2x8x32xf32>
    tpu.vector_store %arg15[%c0_116, %c0_117, %c0_118], %322 {strides = array<i32>} : memref<2x8x32xf32, #tpu.memory_space<vmem>>, vector<2x8x32xf32>,
    return
  }
}

</mosaic_0001>

<bundles_post_ra>
// kernel: tpu_custom_call.1
= control target key start
LH: loop header
LB: loop body
LE: loop exit
PB: predicated region body
PF: predicated region fallthrough
CT: control target
= control target key end

     0   :  { %20 = vsyncpa [#allocation3], 0  ;;  %s5204_s0 = inlined_call_operand.vmem [shape: s32[2,1,1], index: 0, kind: input, shape index: {}]   ;;  %s5205_s1 = inlined_call_operand.hbm [shape: f32[2,8,32], index: 1, kind: input, shape index: {}]   ;;  %s5206_s2 = inlined_call_operand.hbm [shape: f32[2,8,32], index: 2, kind: input, shape index: {}]   ;;  %s5207_s3 = inlined_call_operand.vmem [shape: f32[32,32], index: 3, kind: input, shape index: {}]   ;;  %s5208_s4 = inlined_call_operand.vmem [shape: f32[32,64], index: 4, kind: input, shape index: {}]   ;;  %s5209_s5 = inlined_call_operand.vmem [shape: f32[32,32], index: 5, kind: input, shape index: {}]   ;;  %s5210_s6 = inlined_call_operand.hbm [shape: f32[32,32], index: 6, kind: input, shape index: {}]   ;;  %s5211_s7 = inlined_call_operand.hbm [shape: f32[32,64], index: 7, kind: input, shape index: {}]   ;;  %s5212_s8 = inlined_call_operand.hbm [shape: f32[32,32], index: 8, kind: input, shape index: {}]   ;;  %s5213_s9 = inlined_call_operand.hbm [shape: f32[32,64], index: 9, kind: input, shape index: {}]   ;;  %s5214_s10 = inlined_call_operand.vmem [shape: f32[1,64], index: 10, kind: input, shape index: {}]   ;;  %s5215_s11 = inlined_call_operand.vmem [shape: f32[64,32], index: 11, kind: input, shape index: {}]   ;;  %s5216_s12 = inlined_call_operand.vmem [shape: f32[1,32], index: 12, kind: input, shape index: {}]   ;;  %s5217_s13 = inlined_call_operand.vmem [shape: f32[3,1,32], index: 13, kind: input, shape index: {}]   ;;  %s5218_s14 = inlined_call_operand.vmem [shape: f32[3,1,32], index: 14, kind: input, shape index: {}]   ;;  %s5219_s15 = inlined_call_operand.hbm [shape: f32[2,8,32], index: 15, kind: output, shape index: {}]  }
   0x1   :  { %21 = vsyncpa [#allocation6], 0 }
   0x2   :  { %22 = vsyncpa [#allocation9], 0 }
   0x3   :  { %23 = vsyncpa [#allocation12], 0 }
   0x4   :  { %24 = vsyncpa [#allocation4], 0  ;;  %s4486_s18 = smov [#allocation5]   ;;  %s4487_s20 = smov [#allocation8]  }
   0x5   :  { %s44_s19 = sshll.u32 %s4486_s18, 4  ;;  %s74_s21 = sshll.u32 %s4487_s20, 4  ;;  %s45_s19 = int_to_ptr.vmem [resolvable:$true] %s44_s19  ;;  %s4581_s21 = int_to_ptr.vmem [resolvable:$true] %s74_s21 }
   0x6   :  { %s4322_s24 = scalar_lea.hbm %s5206_s2, 256 }
   0x7   :  { %p4323_p0 = scmp.ne.s32.totalorder %s5206_s2, %s4322_s24  ;;  %p4326_p1 = scmp.lt.u32.totalorder %s4322_s24, %s5206_s2 }
   0x9   :  { %p4328_p2 = pnand %p4326_p1, %p4323_p0 }
   0xb   :  { %4331 = shalt.err (!%p4328_p2)
}
   0xc   :  { %s4332_s29 = scalar_lea.vmem %s45_s19, 256  ;;  %p4337_p4 = scmp.lt.s32.totalorder %s45_s19, %s45_s19 }
   0xd   :  { %p4333_p3 = scmp.ne.s32.totalorder %s45_s19, %s4332_s29  ;;  %p4338_p5 = scmp.lt.s32.totalorder %s4332_s29, %s4332_s29 }
   0xf   :  { %p4339_p6 = por %p4338_p5, %p4337_p4 }
  0x11   :  { %p4340_p7 = pnand %p4339_p6, %p4333_p3 }
  0x13   :  { %4343 = shalt.err (!%p4340_p7)
}
  0x14   :  { %s4488_s30 = smov 128   ;;  %s4489_s16 = smov 8  }
  0x15   :  { %50 = dma.hbm_to_vmem [thread:$0]  %s5206_s2, 256, %s45_s19, [#allocation6], %s4488_s30, %s4488_s30, %s4489_s16  }
  0x16   :  { %s4344_s23 = scalar_lea.hbm %s5211_s7, 512 }
  0x17   :  { %p4345_p8 = scmp.ne.s32.totalorder %s5211_s7, %s4344_s23  ;;  %p4348_p9 = scmp.lt.u32.totalorder %s4344_s23, %s5211_s7 }
  0x19   :  { %p4350_p10 = pnand %p4348_p9, %p4345_p8 }
  0x1b   :  { %4353 = shalt.err (!%p4350_p10)
}
  0x1c   :  { %s4354_s28 = scalar_lea.vmem %s4581_s21, 512  ;;  %p4359_p12 = scmp.lt.s32.totalorder %s4581_s21, %s4581_s21 }
  0x1d   :  { %p4355_p11 = scmp.ne.s32.totalorder %s4581_s21, %s4354_s28  ;;  %p4360_p13 = scmp.lt.s32.totalorder %s4354_s28, %s4354_s28 }
  0x1f   :  { %p4361_p0 = por %p4360_p13, %p4359_p12 }
  0x21   :  { %p4362_p1 = pnand %p4361_p0, %p4355_p11 }
  0x23   :  { %4365 = shalt.err (!%p4362_p1)
}
  0x24   :  { %80 = dma.hbm_to_vmem [thread:$0]  %s5211_s7, 512, %s4581_s21, [#allocation9], %s4488_s30, %s4488_s30, %s4489_s16  }
  0x25   :  { %s4490_s29 = smov [#allocation2]   ;;  %s4491_s18 = smov [#allocation7]  }
  0x26   :  { %s32_s17 = sshll.u32 %s4490_s29, 4  ;;  %s62_s20 = sshll.u32 %s4491_s18, 4  ;;  %s33_s17 = int_to_ptr.vmem [resolvable:$true] %s32_s17  ;;  %s4618_s20 = int_to_ptr.vmem [resolvable:$true] %s62_s20 }
  0x27   :  { %s4366_s24 = scalar_lea.hbm %s5205_s1, 256 }
  0x28   :  { %p4367_p2 = scmp.ne.s32.totalorder %s5205_s1, %s4366_s24  ;;  %p4370_p3 = scmp.lt.u32.totalorder %s4366_s24, %s5205_s1 }
  0x2a   :  { %p4372_p4 = pnand %p4370_p3, %p4367_p2 }
  0x2c   :  { %4375 = shalt.err (!%p4372_p4)
}
  0x2d   :  { %s4376_s7 = scalar_lea.vmem %s33_s17, 256  ;;  %p4381_p6 = scmp.lt.s32.totalorder %s33_s17, %s33_s17 }
  0x2e   :  { %p4377_p5 = scmp.ne.s32.totalorder %s33_s17, %s4376_s7  ;;  %p4382_p7 = scmp.lt.s32.totalorder %s4376_s7, %s4376_s7 }
  0x30   :  { %p4383_p8 = por %p4382_p7, %p4381_p6 }
  0x32   :  { %p4384_p9 = pnand %p4383_p8, %p4377_p5 }
  0x34   :  { %4387 = shalt.err (!%p4384_p9)
}
  0x35   :  { %38 = dma.hbm_to_vmem [thread:$0]  %s5205_s1, 256, %s33_s17, [#allocation3], %s4488_s30, %s4488_s30, %s4489_s16  }
  0x36   :  { %s4388_s18 = scalar_lea.hbm %s5210_s6, 512 }
  0x37   :  { %p4389_p10 = scmp.ne.s32.totalorder %s5210_s6, %s4388_s18  ;;  %p4392_p11 = scmp.lt.u32.totalorder %s4388_s18, %s5210_s6 }
  0x39   :  { %p4394_p12 = pnand %p4392_p11, %p4389_p10 }
  0x3b   :  { %4397 = shalt.err (!%p4394_p12)
}
  0x3c   :  { %s4398_s26 = scalar_lea.vmem %s4618_s20, 512  ;;  %p4403_p0 = scmp.lt.s32.totalorder %s4618_s20, %s4618_s20 }
  0x3d   :  { %p4399_p13 = scmp.ne.s32.totalorder %s4618_s20, %s4398_s26  ;;  %p4404_p1 = scmp.lt.s32.totalorder %s4398_s26, %s4398_s26 }
  0x3f   :  { %p4405_p2 = por %p4404_p1, %p4403_p0 }
  0x41   :  { %p4406_p3 = pnand %p4405_p2, %p4399_p13 }
  0x43   :  { %4409 = shalt.err (!%p4406_p3)
}
  0x44   :  { %68 = dma.hbm_to_vmem [thread:$0]  %s5210_s6, 512, %s4618_s20, [#allocation6], %s4488_s30, %s4488_s30, %s4489_s16  }
  0x45   :  { %s4492_s27 = smov [#allocation10]   ;;  %s4493_s7 = smov [#allocation11]  }
  0x46   :  { %s86_s28 = sshll.u32 %s4492_s27, 4  ;;  %s98_s21 = sshll.u32 %s4493_s7, 4  ;;  %s87_s28 = int_to_ptr.vmem [resolvable:$true] %s86_s28  ;;  %s4655_s21 = int_to_ptr.vmem [resolvable:$true] %s98_s21 }
  0x47   :  { %s4410_s29 = scalar_lea.hbm %s5212_s8, 512 }
  0x48   :  { %p4411_p4 = scmp.ne.s32.totalorder %s5212_s8, %s4410_s29  ;;  %p4414_p5 = scmp.lt.u32.totalorder %s4410_s29, %s5212_s8 }
  0x4a   :  { %p4416_p6 = pnand %p4414_p5, %p4411_p4 }
  0x4c   :  { %4419 = shalt.err (!%p4416_p6)
}
  0x4d   :  { %s4420_s6 = scalar_lea.vmem %s87_s28, 512  ;;  %p4425_p8 = scmp.lt.s32.totalorder %s87_s28, %s87_s28 }
  0x4e   :  { %p4421_p7 = scmp.ne.s32.totalorder %s87_s28, %s4420_s6  ;;  %p4426_p9 = scmp.lt.s32.totalorder %s4420_s6, %s4420_s6 }
  0x50   :  { %p4427_p10 = por %p4426_p9, %p4425_p8 }
  0x52   :  { %p4428_p11 = pnand %p4427_p10, %p4421_p7 }
  0x54   :  { %4431 = shalt.err (!%p4428_p11)
}
  0x55   :  { %92 = dma.hbm_to_vmem [thread:$0]  %s5212_s8, 512, %s87_s28, [#allocation9], %s4488_s30, %s4488_s30, %s4489_s16  }
  0x56   :  { %s4432_s17 = scalar_lea.hbm %s5213_s9, 512 }
  0x57   :  { %p4433_p12 = scmp.ne.s32.totalorder %s5213_s9, %s4432_s17  ;;  %p4436_p13 = scmp.lt.u32.totalorder %s4432_s17, %s5213_s9 }
  0x59   :  { %p4438_p0 = pnand %p4436_p13, %p4433_p12 }
  0x5b   :  { %4441 = shalt.err (!%p4438_p0)
}
  0x5c   :  { %s4442_s29 = scalar_lea.vmem %s4655_s21, 512  ;;  %p4447_p2 = scmp.lt.s32.totalorder %s4655_s21, %s4655_s21 }
  0x5d   :  { %p4443_p1 = scmp.ne.s32.totalorder %s4655_s21, %s4442_s29  ;;  %p4448_p3 = scmp.lt.s32.totalorder %s4442_s29, %s4442_s29 }
  0x5f   :  { %p4449_p4 = por %p4448_p3, %p4447_p2 }
  0x61   :  { %p4450_p5 = pnand %p4449_p4, %p4443_p1 }
  0x63   :  { %4453 = shalt.err (!%p4450_p5)
}
  0x64   :  { %104 = dma.hbm_to_vmem [thread:$0]  %s5213_s9, 512, %s4655_s21, [#allocation12], %s4488_s30, %s4488_s30, %s4489_s16  }
  0x65   :  { %4476 = dma.done.wait [#allocation3], 256  }
  0x66   :  { %4477 = vsyncadd [#allocation3], 4294967040 }
  0x67   :  { %4478 = dma.done.wait [#allocation6], 768  }
  0x68   :  { %4479 = vsyncadd [#allocation6], 4294966528 }
  0x69   :  { %4480 = dma.done.wait [#allocation9], 1024  }
  0x6a   :  { %4481 = vsyncadd [#allocation9], 4294966272 }
  0x6b   :  { %4482 = dma.done.wait [#allocation12], 512  }
  0x6c   :  { %4483 = vsyncadd [#allocation12], 4294966784  ;;  %v4494_v0 = vmov 0.0   ;;  %vm191_vm0 = vcmask 261120   ;;  %v179_v1 = vld [vmem:[%s5207_s3] sm:$0xff]  ;;  %v180_v2 = vld [vmem:[%s5207_s3 + $0x8] sm:$0xff]  ;;  %v137_v15 = vlaneseq }
  0x6d   :  { %3899 = vmatprep.subr.mxu0 %v4494_v0  ;;  %v181_v3 = vld [vmem:[%s5207_s3 + $0x10] sm:$0xff]  ;;  %v4133_v4 = vpack.c.bf16 %v180_v2, %v179_v1  ;;  %v182_v5 = vld [vmem:[%s5207_s3 + $0x18] sm:$0xff]  ;;  %v4705_v6 = vld [vmem:[#allocation2] sm:$0xff]  ;;  %vm4495_vm1 = vmmov 0   ;;  %v4496_v28 = vmov -1000000.0  }
  0x6e   :  { %v4137_v7 = vpack.c.bf16 %v182_v5, %v181_v3  ;;  %3885 = vmatprep.mubr.msk.f32.mxu1 %vm191_vm0, %v4705_v6  ;;  %v183_v8 = vld [vmem:[%s5208_s4] sm:$0xff]  ;;  %v184_v9 = vld [vmem:[%s5208_s4 + $0x8] sm:$0xff]  ;;  %v185_v11 = vld [vmem:[%s5208_s4 + $0x10] sm:$0xff]  ;;  %3901 = vmatprep.mubr.msk.f32.mxu0 %vm4495_vm1, %v4494_v0  ;;  %v4734_v16 = vand.u32 127, %v137_v15  ;;  %v4785_v27 = vshrl.u32 %v137_v15, 7  ;;  %vm502_vm7 = vcmask 64512  }
  0x6f   :  { %4134 = vmatprep.subr.bf16.mxu1 %v4133_v4  ;;  %v4141_v10 = vpack.c.bf16 %v184_v9, %v183_v8  ;;  %v186_v12 = vld [vmem:[%s5208_s4 + $0x18] sm:$0xff]  ;;  %v4721_v13 = vld [vmem:[#allocation2 + $0x8] sm:$0xff]  ;;  %s4497_s4 = smov 32   ;;  %s4498_s19 = smov 96  }
  0x70   :  { %4136 = vmatpush3.bf16.msra.mxu1 %v4133_v4  ;;  %v4145_v14 = vpack.c.bf16 %v186_v12, %v185_v11  ;;  %vm164_vm2 = vcmp.lt.s32.totalorder %v4734_v16, 8  ;;  %vm167_vm3 = vcmp.ge.s32.totalorder %v4734_v16, 8  ;;  %vm168_vm4 = vcmp.lt.s32.totalorder %v4734_v16, 16  ;;  %s4500_s3 = smov [#allocation13]  }
  0x71   :  { %4138 = vmatprep.subr.bf16.mxu1 %v4137_v7  ;;  %v4744_v19 = vsel %vm164_vm2, 1.0, %v4494_v0  ;;  %vm169_vm5 = vmand %vm167_vm3, %vm168_vm4  ;;  %vm141_vm6 = vcmp.le.s32.totalorder %v4734_v16, %v4785_v27  ;;  %vm171_vm8 = vcmp.ge.s32.totalorder %v4734_v16, 16  ;;  %vm172_vm9 = vcmp.lt.s32.totalorder %v4734_v16, 24  ;;  %s3670_s7 = sshll.u32 %s4500_s3, 4  ;;  %s3671_s7 = int_to_ptr.vmem [resolvable:$true] %s3670_s7 }
  0x72   :  { %v4758_v23 = vsel %vm169_vm5, 1.0, %v4494_v0  ;;  %v4790_v29 = vsel %vm141_vm6, 0.0, %v4496_v28  ;;  %vm173_vm10 = vmand %vm171_vm8, %vm172_vm9  ;;  %vm175_vm11 = vcmp.ge.s32.totalorder %v4734_v16, 24  ;;  %vm176_vm12 = vcmp.lt.s32.totalorder %v4734_v16, 32  ;;  %s4454_s2 = scalar_lea.vmem %s3671_s7, 256  ;;  %p4459_p7 = scmp.lt.s32.totalorder %s3671_s7, %s3671_s7 }
  0x73   :  { %vm177_vm13 = vmand %vm175_vm11, %vm176_vm12  ;;  %p4455_p6 = scmp.ne.s32.totalorder %s3671_s7, %s4454_s2  ;;  %p4460_p8 = scmp.lt.s32.totalorder %s4454_s2, %s4454_s2 }
  0x74   :  { %4140 = vmatpush3.bf16.msra.mxu1 %v4137_v7 }
  0x75   :  { %4142 = vmatprep.subr.bf16.mxu1 %v4141_v10  ;;  %p4461_p9 = por %p4460_p8, %p4459_p7 }
  0x77   :  { %3886 = vmatmul.mubr.msk.f32.vlgmr.msra.gmra.mrb[0].mxu1 %vm191_vm0, %v4721_v13  ;;  %p4462_p10 = pnand %p4461_p9, %p4455_p6 }
  0x78   :  { %4144 = vmatpush3.bf16.msra.mxu1 %v4141_v10  ;;  %3896 = vmatprep.mubr.msk.f32.mxu1 %vm191_vm0, %v4705_v6 }
  0x79   :  { %4146 = vmatprep.subr.bf16.mxu1 %v4145_v14 }
  0x7c   :  { %4148 = vmatpush3.bf16.msra.mxu1 %v4145_v14 }
  0x7d   :  { %3904 = vmatprep.subr.mxu1 %v4494_v0 }
  0x7f   :  { %3897 = vmatmul.mubr.msk.f32.vlgmr.msra.gmra.mrb[2].mxu1 %vm191_vm0, %v4721_v13 }
  0x80   :  { %3906 = vmatprep.mubr.msk.f32.mxu1 %vm4495_vm1, %v4494_v0 }
 0x14a   :  { %v4736_v17 = vpop.f32.mrb[0].mxu1 }
 0x14b   :  { %v4738_v18 = vpop.f32.mrb[1].mxu1  ;;  %v349_v22 = vmul.f32 %v4736_v17, %v4744_v19  ;;  %v532_v25 = vmul.f32 %v4736_v17, %v4758_v23 }
 0x14c   :  { %v348_v24 = vmul.f32 %v4738_v18, %v4744_v19  ;;  %v531_v26 = vmul.f32 %v4738_v18, %v4758_v23 }
 0x152   :  { %v4746_v20 = vpop.f32.mrb[2].mxu1 }
 0x153   :  { %v4748_v21 = vpop.f32.mrb[3].mxu1  ;;  %3905 = vmatpush3.xpose.msk.msra.mxu1 %vm191_vm0, %v4746_v20 }
 0x154   :  { %3900 = vmatpush3.xpose.msk.msra.mxu0 %vm191_vm0, %v4748_v21  ;;  %3914 = vmatprep.subr.mxu1 %v4494_v0 }
 0x155   :  { %3909 = vmatprep.subr.mxu0 %v4494_v0 }
 0x156   :  { %3907 = vmatmul.mubr.msk.f32.vlgmr.msra.gmra.mrb[4].mxu1 %vm191_vm0, %v349_v22 }
 0x157   :  { %3902 = vmatmul.mubr.msk.f32.vlgmr.msra.gmra.mrb[0].mxu0 %vm191_vm0, %v348_v24  ;;  %3915 = vmatpush3.xpose.msk.msra.mxu1 %vm191_vm0, %v4746_v20 }
 0x158   :  { %3910 = vmatpush3.xpose.msk.msra.mxu0 %vm191_vm0, %v4748_v21  ;;  %3916 = vmatprep.mubr.msk.f32.mxu1 %vm4495_vm1, %v4494_v0 }
 0x159   :  { %3911 = vmatprep.mubr.msk.f32.mxu0 %vm4495_vm1, %v4494_v0  ;;  %3924 = vmatprep.subr.mxu1 %v4494_v0 }
 0x15a   :  { %3917 = vmatmul.mubr.msk.f32.vlgmr.msra.gmra.mrb[6].mxu1 %vm191_vm0, %v532_v25  ;;  %3919 = vmatprep.subr.mxu0 %v4494_v0 }
 0x15b   :  { %3912 = vmatmul.mubr.msk.f32.vlgmr.msra.gmra.mrb[2].mxu0 %vm191_vm0, %v531_v26  ;;  %3926 = vmatprep.mubr.msk.f32.mxu1 %vm4495_vm1, %v4494_v0 }
 0x15c   :  { %3921 = vmatprep.mubr.msk.f32.mxu0 %vm4495_vm1, %v4494_v0 }
 0x229   :  { %v498_v30 = vpop.f32.mrb[4].mxu1 }
 0x22a   :  { %v422_v31 = vpop.f32.mrb[0].mxu0  ;;  %v3908_v32 = vpop.f32.mrb[5].mxu1  ;;  %v499_v35 = vadd.f32 %v498_v30, %v4790_v29 }
 0x22b   :  { %v423_v33 = vadd.f32 %v422_v31, %v4790_v29  ;;  %v3903_v34 = vpop.f32.mrb[1].mxu0 }
 0x22c   :  { %v506_v43 = vsel %vm502_vm7, %v499_v35, -inf }
 0x22d   :  { %v675_v36 = vpop.f32.mrb[6].mxu1  ;;  %v503_v37 = vsel %vm502_vm7, %v423_v33, -inf }
 0x22e   :  { %v3918_v38 = vpop.f32.mrb[7].mxu1  ;;  %504 = vmax.xlane.f32.xlu1 %v503_v37  ;;  %v602_v39 = vpop.f32.mrb[2].mxu0  ;;  %v676_v42 = vadd.f32 %v675_v36, %v4790_v29 }
 0x22f   :  { %v603_v40 = vadd.f32 %v602_v39, %v4790_v29  ;;  %v3913_v41 = vpop.f32.mrb[3].mxu0 }
 0x230   :  { %v682_v45 = vsel %vm502_vm7, %v676_v42, -inf }
 0x231   :  { %v679_v44 = vsel %vm502_vm7, %v603_v40, -inf }
 0x232   :  { %507 = vmax.xlane.f32.xlu1 %v506_v43  ;;  %680 = vmax.xlane.f32.xlu0 %v679_v44 }
 0x236   :  { %683 = vmax.xlane.f32.xlu0 %v682_v45 }
 0x243   :  { %526 = vrot.lane.b32.xlu1 %v4744_v19, %s4497_s4 }
 0x24c   :  { %702 = vrot.lane.b32.xlu0 %v4758_v23, %s4497_s4 }
 0x2bb   :  { %v505_v46 = vpop.xlane.xlu1 %504 }
 0x2bc   :  { %v509_v47 = vsub.f32 %v423_v33, %v505_v46  ;;  %v4839_v33 = vsel %vm173_vm10, 1.0, %v4494_v0 }
 0x2bd   :  { %v1016_v36 = vmul.f32 %v4736_v17, %v4839_v33  ;;  %v1015_v39 = vmul.f32 %v4738_v18, %v4839_v33 }
 0x2be   :  { %v511_v48 = vmul.f32 1.442695, %v509_v47 }
 0x2bf   :  { %v508_v49 = vpop.xlane.xlu1 %507  ;;  %v681_v50 = vpop.xlane.xlu0 %680 }
 0x2c0   :  { %4246 = vpow2.f32 %v511_v48  ;;  %v510_v51 = vsub.f32 %v499_v35, %v508_v49  ;;  %v685_v4 = vsub.f32 %v603_v40, %v681_v50 }
 0x2c2   :  { %v513_v52 = vmul.f32 1.442695, %v510_v51  ;;  %v687_v5 = vmul.f32 1.442695, %v685_v4 }
 0x2c3   :  { %v684_v53 = vpop.xlane.xlu0 %683  ;;  %v4814_v1 = vpop.permute.xlu1 %526 }
 0x2c4   :  { %4248 = vpow2.f32 %v513_v52  ;;  %v686_v54 = vsub.f32 %v676_v42, %v684_v53  ;;  %v529_v2 = vmul.f32 %v4814_v1, %v4748_v21  ;;  %v530_v9 = vmul.f32 %v4746_v20, %v4814_v1 }
 0x2c6   :  { %v689_v55 = vmul.f32 1.442695, %v686_v54 }
 0x2c7   :  { %v4810_v62 = vpop.permute.xlu0 %702 }
 0x2c8   :  { %4250 = vpow2.f32 %v689_v55  ;;  %v706_v63 = vmul.f32 %v4746_v20, %v4810_v62  ;;  %v705_v3 = vmul.f32 %v4810_v62, %v4748_v21 }
 0x2c9   :  { %4252 = vpow2.f32 %v687_v5  ;;  %v4885_v5 = vsel %vm177_vm13, 1.0, %v4494_v0 }
 0x2ca   :  { %v4804_v56 = vpop.eup %4246 }
 0x2cb   :  { %v515_v57 = vsel %vm502_vm7, %v4804_v56, 0.0 }
 0x2cc   :  { %516 = vadd.xlane.f32.xlu0 %v515_v57 }
 0x2ce   :  { %v4249_v58 = vpop.eup %4248 }
 0x2cf   :  { %v518_v59 = vsel %vm502_vm7, %v4249_v58, 0.0 }
 0x2d0   :  { %519 = vadd.xlane.f32.xlu1 %v518_v59 }
 0x2d2   :  { %v4251_v60 = vpop.eup %4250 }
 0x2d3   :  { %v694_v61 = vsel %vm502_vm7, %v4251_v60, 0.0  ;;  %v4253_v7 = vpop.eup %4252 }
 0x2d4   :  { %695 = vadd.xlane.f32.xlu0 %v694_v61  ;;  %v691_v8 = vsel %vm502_vm7, %v4253_v7, 0.0 }
 0x2e1   :  { %785 = vrot.lane.b32.xlu1 %v706_v63, %s4498_s19 }
 0x2e5   :  { %862 = vrot.lane.b32.xlu1 %v529_v2, %s4498_s19 }
 0x2ea   :  { %708 = vrot.lane.b32.xlu0 %v705_v3, %s4498_s19 }
 0x309   :  { %692 = vadd.xlane.f32.xlu1 %v691_v8  ;;  %v1348_v8 = vmul.f32 %v4736_v17, %v4885_v5  ;;  %v1347_v17 = vmul.f32 %v4738_v18, %v4885_v5 }
 0x31a   :  { %939 = vrot.lane.b32.xlu1 %v530_v9, %s4498_s19 }
 0x359   :  { %v517_v10 = vpop.xlane.xlu0 %516 }
 0x35d   :  { %v520_v11 = vpop.xlane.xlu1 %519 }
 0x361   :  { %v786_v12 = vpop.permute.xlu1 %785  ;;  %v696_v14 = vpop.xlane.xlu0 %695 }
 0x362   :  { %4254 = vrcp.f32 %v696_v14  ;;  %3925 = vmatpush3.msra.mxu1 %v786_v12 }
 0x363   :  { %3934 = vmatprep.subr.mxu1 %v4494_v0  ;;  %4256 = vrcp.f32 %v520_v11 }
 0x365   :  { %v709_v15 = vpop.permute.xlu0 %708  ;;  %v863_v25 = vpop.permute.xlu1 %862 }
 0x366   :  { %3920 = vmatpush3.msra.mxu0 %v709_v15 }
 0x367   :  { %3929 = vmatprep.subr.mxu0 %v4494_v0 }
 0x36c   :  { %v4255_v22 = vpop.eup %4254 }
 0x36d   :  { %v700_v24 = vmul.f32 %v4255_v22, %v4251_v60  ;;  %v4257_v30 = vpop.eup %4256 }
 0x36e   :  { %v524_v31 = vmul.f32 %v4257_v30, %v4249_v58 }
 0x36f   :  { %3927 = vmatmul.mubr.msk.f32.vlgmr.msra.gmra.mrb[8].mxu1 %vm502_vm7, %v700_v24 }
 0x370   :  { %3936 = vmatprep.mubr.msk.f32.mxu1 %vm4495_vm1, %v4494_v0 }
 0x396   :  { %v693_v26 = vpop.xlane.xlu1 %692 }
 0x397   :  { %4258 = vrcp.f32 %v693_v26 }
 0x398   :  { %4260 = vrcp.f32 %v517_v10 }
 0x39a   :  { %v940_v32 = vpop.permute.xlu1 %939 }
 0x39b   :  { %3935 = vmatpush3.msra.mxu1 %v940_v32 }
 0x39c   :  { %3937 = vmatmul.mubr.msk.f32.vlgmr.msra.gmra.mrb[8].mxu1 %vm502_vm7, %v524_v31  ;;  %3944 = vmatprep.subr.mxu1 %v4494_v0 }
 0x39d   :  { %3946 = vmatprep.mubr.msk.f32.mxu1 %vm4495_vm1, %v4494_v0 }
 0x3a1   :  { %v4259_v34 = vpop.eup %4258 }
 0x3a2   :  { %v699_v35 = vmul.f32 %v4259_v34, %v4253_v7  ;;  %3945 = vmatpush3.xpose.msk.msra.mxu1 %vm191_vm0, %v4746_v20  ;;  %v4261_v37 = vpop.eup %4260 }
 0x3a3   :  { %3954 = vmatprep.subr.mxu1 %v4494_v0  ;;  %v523_v38 = vmul.f32 %v4261_v37, %v4804_v56 }
 0x3a4   :  { %3922 = vmatmul.mubr.msk.f32.vlgmr.msra.gmra.mrb[4].mxu0 %vm502_vm7, %v699_v35 }
 0x3a5   :  { %3930 = vmatpush3.msra.mxu0 %v863_v25  ;;  %3947 = vmatmul.mubr.msk.f32.vlgmr.msra.gmra.mrb[10].mxu1 %vm191_vm0, %v1016_v36 }
 0x3a6   :  { %3931 = vmatprep.mubr.msk.f32.mxu0 %vm4495_vm1, %v4494_v0  ;;  %3939 = vmatprep.subr.mxu0 %v4494_v0 }
 0x3a7   :  { %3956 = vmatprep.mubr.msk.f32.mxu1 %vm4495_vm1, %v4494_v0 }
 0x3ac   :  { %3932 = vmatmul.mubr.msk.f32.vlgmr.msra.gmra.mrb[4].mxu0 %vm502_vm7, %v523_v38 }
 0x3ad   :  { %3940 = vmatpush3.xpose.msk.msra.mxu0 %vm191_vm0, %v4748_v21  ;;  %3941 = vmatprep.mubr.msk.f32.mxu0 %vm4495_vm1, %v4494_v0 }
 0x3ae   :  { %3949 = vmatprep.subr.mxu0 %v4494_v0 }
 0x3b0   :  { %3942 = vmatmul.mubr.msk.f32.vlgmr.msra.gmra.mrb[6].mxu0 %vm191_vm0, %v1015_v39 }
 0x3b1   :  { %3951 = vmatprep.mubr.msk.f32.mxu0 %vm4495_vm1, %v4494_v0 }
 0x478   :  { %v1159_v40 = vpop.f32.mrb[10].mxu1 }
 0x479   :  { %v1160_v41 = vadd.f32 %v1159_v40, %v4790_v29  ;;  %v3948_v42 = vpop.f32.mrb[11].mxu1 }
 0x47b   :  { %v1166_v43 = vsel %vm502_vm7, %v1160_v41, -inf }
 0x47c   :  { %1167 = vmax.xlane.f32.xlu1 %v1166_v43 }
 0x483   :  { %v1086_v44 = vpop.f32.mrb[6].mxu0 }
 0x484   :  { %v1087_v45 = vadd.f32 %v1086_v44, %v4790_v29  ;;  %v3943_v46 = vpop.f32.mrb[7].mxu0 }
 0x486   :  { %v1163_v47 = vsel %vm502_vm7, %v1087_v45, -inf }
 0x487   :  { %1164 = vmax.xlane.f32.xlu0 %v1163_v47 }
 0x49d   :  { %1186 = vrot.lane.b32.xlu0 %v4839_v33, %s4497_s4 }
 0x509   :  { %v1168_v48 = vpop.xlane.xlu1 %1167 }
 0x50a   :  { %v1170_v49 = vsub.f32 %v1160_v41, %v1168_v48 }
 0x50c   :  { %v1173_v50 = vmul.f32 1.442695, %v1170_v49  ;;  %v188_v49 = vld [vmem:[%s5209_s5 + $0x8] sm:$0xff] }
 0x50e   :  { %4262 = vpow2.f32 %v1173_v50  ;;  %v189_v50 = vld [vmem:[%s5209_s5 + $0x10] sm:$0xff] }
 0x514   :  { %v1165_v51 = vpop.xlane.xlu0 %1164 }
 0x515   :  { %v1169_v52 = vsub.f32 %v1087_v45, %v1165_v51 }
 0x517   :  { %v1171_v53 = vmul.f32 1.442695, %v1169_v52  ;;  %v190_v52 = vld [vmem:[%s5209_s5 + $0x18] sm:$0xff] }
 0x518   :  { %v4263_v54 = vpop.eup %4262  ;;  %v4871_v55 = vpop.permute.xlu0 %1186 }
 0x519   :  { %4264 = vpow2.f32 %v1171_v53  ;;  %v1178_v56 = vsel %vm502_vm7, %v4263_v54, 0.0  ;;  %v1190_v57 = vmul.f32 %v4746_v20, %v4871_v55  ;;  %v1189_v60 = vmul.f32 %v4871_v55, %v4748_v21 }
 0x51a   :  { %1179 = vadd.xlane.f32.xlu1 %v1178_v56  ;;  %v4153_v53 = vpack.c.bf16 %v190_v52, %v189_v50  ;;  %v1812_v56 = vld [vmem:[#allocation8 + $0x8] sm:$0xff] }
 0x51b   :  { %1269 = vrot.lane.b32.xlu0 %v1190_v57, %s4498_s19 }
 0x523   :  { %v4265_v58 = vpop.eup %4264 }
 0x524   :  { %v1175_v59 = vsel %vm502_vm7, %v4265_v58, 0.0 }
 0x525   :  { %1176 = vadd.xlane.f32.xlu1 %v1175_v59 }
 0x536   :  { %1192 = vrot.lane.b32.xlu1 %v1189_v60, %s4498_s19  ;;  %v1813_v60 = vld [vmem:[#allocation8 + $0x10] sm:$0xff] }
 0x58d   :  { %v1270_v61 = vpop.permute.xlu0 %1269 }
 0x58e   :  { %3955 = vmatpush3.msra.mxu1 %v1270_v61  ;;  %v1814_v61 = vld [vmem:[#allocation8 + $0x18] sm:$0xff] }
 0x58f   :  { %3964 = vmatprep.subr.mxu1 %v4494_v0 }
 0x5a7   :  { %v1180_v63 = vpop.xlane.xlu1 %1179 }
 0x5a8   :  { %4266 = vrcp.f32 %v1180_v63 }
 0x5b2   :  { %v4267_v2 = vpop.eup %4266  ;;  %v1177_v3 = vpop.xlane.xlu1 %1176 }
 0x5b3   :  { %v1184_v4 = vmul.f32 %v4267_v2, %v4263_v54  ;;  %4268 = vrcp.f32 %v1177_v3  ;;  %v1811_v54 = vld [vmem:[#allocation8] sm:$0xff]  ;;  %v4169_v2 = vpack.c.bf16 %v1814_v61, %v1813_v60  ;;  %v135_v3 = vld [vmem:[#allocation5] sm:$0xff] }
 0x5b4   :  { %v4165_v57 = vpack.c.bf16 %v1812_v56, %v1811_v54  ;;  %v143_v54 = vld [vmem:[%s5204_s0] sm:$0x1]  ;;  %v144_v56 = vld [vmem:[%s5204_s0 + $0x1] sm:$0x1] }
 0x5b5   :  { %3957 = vmatmul.mubr.msk.f32.vlgmr.msra.gmra.mrb[8].mxu1 %vm502_vm7, %v1184_v4 }
 0x5b6   :  { %3965 = vmatpush3.xpose.msk.msra.mxu1 %vm191_vm0, %v4746_v20  ;;  %v1193_v7 = vpop.permute.xlu1 %1192  ;;  %3966 = vmatprep.mubr.msk.f32.mxu1 %vm4495_vm1, %v4494_v0 }
 0x5b7   :  { %3950 = vmatpush3.msra.mxu0 %v1193_v7  ;;  %3974 = vmatprep.subr.mxu1 %v4494_v0  ;;  %v136_v7 = vld [vmem:[#allocation5 + $0x8] sm:$0xff] }
 0x5b8   :  { %3959 = vmatprep.subr.mxu0 %v4494_v0 }
 0x5b9   :  { %3967 = vmatmul.mubr.msk.f32.vlgmr.msra.gmra.mrb[12].mxu1 %vm191_vm0, %v1348_v8 }
 0x5ba   :  { %3976 = vmatprep.mubr.msk.f32.mxu1 %vm4495_vm1, %v4494_v0 }
 0x5bd   :  { %v4269_v9 = vpop.eup %4268 }
 0x5be   :  { %v1183_v10 = vmul.f32 %v4269_v9, %v4265_v58 }
 0x5c0   :  { %3952 = vmatmul.mubr.msk.f32.vlgmr.msra.gmra.mrb[4].mxu0 %vm502_vm7, %v1183_v10 }
 0x5c1   :  { %3960 = vmatpush3.xpose.msk.msra.mxu0 %vm191_vm0, %v4748_v21  ;;  %3961 = vmatprep.mubr.msk.f32.mxu0 %vm4495_vm1, %v4494_v0 }
 0x5c2   :  { %3969 = vmatprep.subr.mxu0 %v4494_v0 }
 0x5c4   :  { %3962 = vmatmul.mubr.msk.f32.vlgmr.msra.gmra.mrb[8].mxu0 %vm191_vm0, %v1347_v17 }
 0x5c5   :  { %3971 = vmatprep.mubr.msk.f32.mxu0 %vm4495_vm1, %v4494_v0 }
 0x68c   :  { %v1491_v11 = vpop.f32.mrb[12].mxu1 }
 0x68d   :  { %v1492_v12 = vadd.f32 %v1491_v11, %v4790_v29  ;;  %v3968_v14 = vpop.f32.mrb[13].mxu1 }
 0x68f   :  { %v1498_v15 = vsel %vm502_vm7, %v1492_v12, -inf }
 0x690   :  { %1499 = vmax.xlane.f32.xlu1 %v1498_v15 }
 0x697   :  { %v1418_v22 = vpop.f32.mrb[8].mxu0 }
 0x698   :  { %v1419_v24 = vadd.f32 %v1418_v22, %v4790_v29  ;;  %v3963_v25 = vpop.f32.mrb[9].mxu0 }
 0x69a   :  { %v1495_v18 = vsel %vm502_vm7, %v1419_v24, -inf }
 0x69b   :  { %1496 = vmax.xlane.f32.xlu0 %v1495_v18 }
 0x6b1   :  { %1518 = vrot.lane.b32.xlu0 %v4885_v5, %s4497_s4 }
 0x71d   :  { %v1500_v26 = vpop.xlane.xlu1 %1499 }
 0x71e   :  { %v1502_v30 = vsub.f32 %v1492_v12, %v1500_v26 }
 0x720   :  { %v1505_v31 = vmul.f32 1.442695, %v1502_v30 }
 0x722   :  { %4270 = vpow2.f32 %v1505_v31 }
 0x728   :  { %v1497_v32 = vpop.xlane.xlu0 %1496 }
 0x729   :  { %v1501_v34 = vsub.f32 %v1419_v24, %v1497_v32 }
 0x72b   :  { %v1503_v35 = vmul.f32 1.442695, %v1501_v34  ;;  %v1807_v34 = vld [vmem:[#allocation7] sm:$0xff] }
 0x72c   :  { %v4271_v36 = vpop.eup %4270  ;;  %v4916_v37 = vpop.permute.xlu0 %1518 }
 0x72d   :  { %4272 = vpow2.f32 %v1503_v35  ;;  %v1510_v29 = vsel %vm502_vm7, %v4271_v36, 0.0  ;;  %v1522_v38 = vmul.f32 %v4746_v20, %v4916_v37  ;;  %v1521_v41 = vmul.f32 %v4916_v37, %v4748_v21  ;;  %v187_v21 = vld [vmem:[%s5209_s5] sm:$0xff]  ;;  %v1808_v35 = vld [vmem:[#allocation7 + $0x8] sm:$0xff] }
 0x72e   :  { %1511 = vadd.xlane.f32.xlu1 %v1510_v29  ;;  %v4149_v51 = vpack.c.bf16 %v188_v49, %v187_v21  ;;  %v1809_v29 = vld [vmem:[#allocation7 + $0x10] sm:$0xff] }
 0x72f   :  { %1601 = vrot.lane.b32.xlu0 %v1522_v38, %s4498_s19  ;;  %v1810_v38 = vld [vmem:[#allocation7 + $0x18] sm:$0xff] }
 0x737   :  { %v4273_v39 = vpop.eup %4272 }
 0x738   :  { %v1507_v40 = vsel %vm502_vm7, %v4273_v39, 0.0 }
 0x739   :  { %1508 = vadd.xlane.f32.xlu1 %v1507_v40 }
 0x74a   :  { %1524 = vrot.lane.b32.xlu1 %v1521_v41, %s4498_s19 }
 0x7a1   :  { %v1602_v42 = vpop.permute.xlu0 %1601 }
 0x7a2   :  { %3975 = vmatpush3.msra.mxu1 %v1602_v42 }
 0x7bb   :  { %v1512_v43 = vpop.xlane.xlu1 %1511 }
 0x7bc   :  { %4274 = vrcp.f32 %v1512_v43 }
 0x7c6   :  { %v4275_v44 = vpop.eup %4274  ;;  %v1509_v45 = vpop.xlane.xlu1 %1508 }
 0x7c7   :  { %v1516_v46 = vmul.f32 %v4275_v44, %v4271_v36  ;;  %4276 = vrcp.f32 %v1509_v45  ;;  %v4157_v36 = vpack.c.bf16 %v1808_v35, %v1807_v34 }
 0x7c9   :  { %3977 = vmatmul.mubr.msk.f32.vlgmr.msra.gmra.mrb[8].mxu1 %vm502_vm7, %v1516_v46  ;;  %4158 = vmatprep.subr.bf16.mxu1 %v4157_v36 }
 0x7ca   :  { %v1525_v20 = vpop.permute.xlu1 %1524  ;;  %4160 = vmatpush3.bf16.msra.mxu1 %v4157_v36 }
 0x7cb   :  { %3970 = vmatpush3.msra.mxu0 %v1525_v20  ;;  %v3715_v20 = vld [vmem:[%s5217_s13] ss:$0 sm:$0xff] }
 0x7cc   :  { %4150 = vmatprep.subr.bf16.mxu0 %v4149_v51 }
 0x7d1   :  { %v4277_v47 = vpop.eup %4276 }
 0x7d2   :  { %v1515_v48 = vmul.f32 %v4277_v47, %v4273_v39  ;;  %v4161_v39 = vpack.c.bf16 %v1810_v38, %v1809_v29 }
 0x7d4   :  { %3972 = vmatmul.mubr.msk.f32.vlgmr.msra.gmra.mrb[4].mxu0 %vm502_vm7, %v1515_v48  ;;  %4162 = vmatprep.subr.bf16.mxu1 %v4161_v39  ;;  %v3716_v48 = vld [vmem:[%s5218_s14] ss:$0 sm:$0xff] }
 0x7d5   :  { %4152 = vmatpush3.bf16.msra.mxu0 %v4149_v51  ;;  %4164 = vmatpush3.bf16.msra.mxu1 %v4161_v39 }
 0x7d6   :  { %4154 = vmatprep.subr.bf16.mxu0 %v4153_v53  ;;  %4012 = vmatprep.subr.mxu1 %v4494_v0 }
 0x7d9   :  { %4156 = vmatpush3.bf16.msra.mxu0 %v4153_v53 }
 0x7da   :  { %4166 = vmatprep.subr.bf16.mxu0 %v4165_v57 }
 0x89c   :  { %v1673_v58 = vpop.f32.mrb[8].mxu1 }
 0x89d   :  { %v3978_v59 = vpop.f32.mrb[9].mxu1 }
 0x8a7   :  { %v1596_v63 = vpop.f32.mrb[4].mxu0 }
 0x8a8   :  { %v3973_v4 = vpop.f32.mrb[5].mxu0  ;;  %3987 = vmatprep.mubr.msk.f32.mxu0 %vm191_vm0, %v1596_v63 }
 0x8a9   :  { %3988 = vmatmul.mubr.msk.f32.vlgmr.msra.gmra.mrb[10].mxu0 %vm191_vm0, %v1673_v58 }
 0x8aa   :  { %4168 = vmatpush3.bf16.msra.mxu0 %v4165_v57  ;;  %4009 = vmatprep.mubr.msk.f32.mxu0 %vm191_vm0, %v135_v3  ;;  %v4499_v57 = vmov 0  }
 0x8ab   :  { %4170 = vmatprep.subr.bf16.mxu0 %v4169_v2  ;;  %4244 = vset.pattern.permute.xlu0 %v4499_v57 }
 0x8ac   :  { %4245 = vset.pattern.permute.xlu1 %v4499_v57 }
 0x8ae   :  { %4172 = vmatpush3.bf16.msra.mxu0 %v4169_v2 }
 0x8af   :  { %4022 = vmatprep.subr.mxu0 %v4494_v0 }
 0x8b1   :  { %4010 = vmatmul.mubr.msk.f32.vlgmr.msra.gmra.mrb[12].mxu0 %vm191_vm0, %v136_v7 }
 0x8b2   :  { %4024 = vmatprep.mubr.msk.f32.mxu0 %vm4495_vm1, %v4494_v0 }
 0x97c   :  { %v3989_v8 = vpop.f32.mrb[10].mxu0 }
 0x97d   :  { %v1761_v9 = vadd.f32 %v3989_v8, %v4721_v13  ;;  %v1751_v10 = vpop.f32.mrb[11].mxu0 }
 0x97e   :  { %v1760_v17 = vadd.f32 %v1751_v10, %v4705_v6 }
 0x97f   :  { %v1767_v11 = vsel %vm191_vm0, %v1761_v9, 0.0 }
 0x980   :  { %1768 = vadd.xlane.f32.xlu1 %v1767_v11  ;;  %v1764_v12 = vsel %vm191_vm0, %v1760_v17, 0.0 }
 0x981   :  { %1765 = vadd.xlane.f32.xlu0 %v1764_v12 }
 0x984   :  { %v4951_v14 = vpop.f32.mrb[12].mxu0 }
 0x985   :  { %v4953_v15 = vpop.f32.mrb[13].mxu0  ;;  %v2158_v57 = vmul.f32 %v4951_v14, %v4814_v1 }
 0x986   :  { %4023 = vmatpush3.xpose.msk.msra.mxu0 %vm191_vm0, %v4953_v15  ;;  %v2329_v34 = vmul.f32 %v4953_v15, %v4810_v62 }
 0x987   :  { %4032 = vmatprep.subr.mxu0 %v4494_v0 }
 0x991   :  { %153 = vperm.xlu1 %4245, %v144_v56  }
 0xa0d   :  { %v1769_v22 = vpop.xlane.xlu1 %1768 }
 0xa0e   :  { %v1772_v13 = vmul.f32 0.03125, %v1769_v22  ;;  %v1766_v24 = vpop.xlane.xlu0 %1765 }
 0xa0f   :  { %v1771_v25 = vmul.f32 0.03125, %v1766_v24 }
 0xa10   :  { %v1774_v6 = vsub.f32 %v1761_v9, %v1772_v13 }
 0xa11   :  { %v1773_v18 = vsub.f32 %v1760_v17, %v1771_v25  ;;  %v154_v7 = vpop.permute.xlu1 %153 }
 0xa12   :  { %v1776_v31 = vmul.f32 %v1774_v6, %v1774_v6 }
 0xa13   :  { %v1775_v26 = vmul.f32 %v1773_v18, %v1773_v18 }
 0xa14   :  { %v1780_v32 = vsel %vm191_vm0, %v1776_v31, 0.0 }
 0xa15   :  { %v1777_v30 = vsel %vm191_vm0, %v1775_v26, 0.0 }
 0xa16   :  { %1778 = vadd.xlane.f32.xlu0 %v1777_v30 }
 0xa1a   :  { %1781 = vadd.xlane.f32.xlu0 %v1780_v32 }
 0xa30   :  { %146 = vperm.xlu0 %4244, %v143_v54  }
 0xaa3   :  { %v1779_v40 = vpop.xlane.xlu0 %1778 }
 0xaa4   :  { %v1783_v41 = vmul.f32 0.03125, %v1779_v40 }
 0xaa6   :  { %v1785_v42 = vadd.f32 1e-05, %v1783_v41 }
 0xaa7   :  { %v1782_v43 = vpop.xlane.xlu0 %1781 }
 0xaa8   :  { %4278 = vrsqrt.f32 %v1785_v42  ;;  %v1784_v44 = vmul.f32 0.03125, %v1782_v43 }
 0xaaa   :  { %v1786_v45 = vadd.f32 1e-05, %v1784_v44 }
 0xaac   :  { %4280 = vrsqrt.f32 %v1786_v45 }
 0xaaf   :  { %v147_v3 = vpop.permute.xlu0 %146 }
 0xab2   :  { %v4279_v46 = vpop.eup %4278 }
 0xab3   :  { %v1789_v47 = vmul.f32 %v4279_v46, %v1773_v18 }
 0xab5   :  { %v1797_v21 = vmul.f32 %v3715_v20, %v1789_v47 }
 0xab6   :  { %v4281_v49 = vpop.eup %4280 }
 0xab7   :  { %v1790_v50 = vmul.f32 %v4281_v49, %v1774_v6  ;;  %v4967_v51 = vadd.f32 %v3716_v48, %v1797_v21 }
 0xab9   :  { %v1798_v52 = vmul.f32 %v3715_v20, %v1790_v50  ;;  %3998 = vmatprep.mubr.msk.f32.mxu1 %vm191_vm0, %v4967_v51 }
 0xabb   :  { %v4971_v53 = vadd.f32 %v3716_v48, %v1798_v52 }
 0xabd   :  { %3999 = vmatmul.mubr.msk.f32.vlgmr.msra.gmra.mrb[14].mxu1 %vm191_vm0, %v4971_v53 }
 0xabe   :  { %4013 = vmatpush3.xpose.msk.msra.mxu1 %vm191_vm0, %v4953_v15  ;;  %4014 = vmatprep.mubr.msk.f32.mxu1 %vm4495_vm1, %v4494_v0 }
 0xabf   :  { %4017 = vmatprep.subr.mxu1 %v4494_v0 }
 0xb90   :  { %v4986_v58 = vpop.f32.mrb[14].mxu1 }
 0xb91   :  { %v4988_v59 = vpop.f32.mrb[15].mxu1  ;;  %v1982_v63 = vmul.f32 %v4986_v58, %v4744_v19  ;;  %v2160_v2 = vmul.f32 %v4986_v58, %v4758_v23 }
 0xb92   :  { %v1981_v60 = vmul.f32 %v4988_v59, %v4744_v19  ;;  %v2159_v61 = vmul.f32 %v4988_v59, %v4758_v23  ;;  %v150_v19 = vsub.s32 0, %v4785_v27 }
 0xb94   :  { %4015 = vmatmul.mubr.msk.f32.vlgmr.msra.gmra.mrb[16].mxu1 %vm191_vm0, %v1981_v60  ;;  %4025 = vmatmul.mubr.msk.f32.vlgmr.msra.gmra.mrb[14].mxu0 %vm191_vm0, %v2159_v61  ;;  %v151_v4 = vrot.slane %v147_v3, %v150_v19  ;;  %v158_v8 = vrot.slane %v154_v7, %v150_v19  ;;  %v2157_v60 = vmul.f32 %v4953_v15, %v4814_v1 }
 0xb95   :  { %4018 = vmatpush3.xpose.msk.msra.mxu1 %vm191_vm0, %v4951_v14  ;;  %4019 = vmatprep.mubr.msk.f32.mxu1 %vm4495_vm1, %v4494_v0 }
 0xb96   :  { %4027 = vmatprep.subr.mxu1 %v4494_v0  ;;  %4034 = vmatprep.mubr.msk.f32.mxu0 %vm4495_vm1, %v4494_v0  ;;  %vm159_vm14 = vcmp.lt.s32.totalorder %v4734_v16, %v151_v4  ;;  %vm160_vm15 = vcmp.lt.s32.totalorder %v4734_v16, %v158_v8 }
 0xb97   :  { %v5019_v9 = vsel %vm159_vm14, 0.0, %v4496_v28  ;;  %v5026_v13 = vsel %vm160_vm15, 0.0, %v4496_v28  ;;  %v2330_v28 = vmul.f32 %v4951_v14, %v4810_v62 }
 0xb98   :  { %4020 = vmatmul.mubr.msk.f32.vlgmr.msra.gmra.mrb[18].mxu1 %vm191_vm0, %v1982_v63 }
 0xb99   :  { %4028 = vmatpush3.xpose.msk.msra.mxu1 %vm191_vm0, %v4951_v14  ;;  %4029 = vmatprep.mubr.msk.f32.mxu1 %vm4495_vm1, %v4494_v0 }
 0xb9a   :  { %4037 = vmatprep.subr.mxu1 %v4494_v0 }
 0xb9c   :  { %4030 = vmatmul.mubr.msk.f32.vlgmr.msra.gmra.mrb[20].mxu1 %vm191_vm0, %v2160_v2 }
 0xb9d   :  { %4039 = vmatprep.mubr.msk.f32.mxu1 %vm4495_vm1, %v4494_v0 }
 0xc67   :  { %v2055_v10 = vpop.f32.mrb[16].mxu1  ;;  %v2230_v23 = vpop.f32.mrb[14].mxu0 }
 0xc68   :  { %v2231_v17 = vadd.f32 %v2230_v23, %v5019_v9  ;;  %v4016_v11 = vpop.f32.mrb[17].mxu1  ;;  %v4026_v12 = vpop.f32.mrb[15].mxu0  ;;  %v2056_v22 = vadd.f32 %v2055_v10, %v5019_v9 }
 0xc6a   :  { %v2307_v27 = vsel %vm502_vm7, %v2231_v17, -inf  ;;  %v2135_v18 = vsel %vm502_vm7, %v2056_v22, -inf }
 0xc6b   :  { %v2131_v24 = vpop.f32.mrb[18].mxu1  ;;  %2308 = vmax.xlane.f32.xlu1 %v2307_v27  ;;  %v2640_v27 = vmul.f32 %v4986_v58, %v4839_v33 }
 0xc6c   :  { %v4021_v25 = vpop.f32.mrb[19].mxu1  ;;  %v2132_v6 = vadd.f32 %v2131_v24, %v5026_v13 }
 0xc6e   :  { %v2138_v32 = vsel %vm502_vm7, %v2132_v6, -inf }
 0xc6f   :  { %v2303_v26 = vpop.f32.mrb[20].mxu1  ;;  %2136 = vmax.xlane.f32.xlu1 %v2135_v18 }
 0xc70   :  { %v2304_v16 = vadd.f32 %v2303_v26, %v5026_v13  ;;  %v4031_v30 = vpop.f32.mrb[21].mxu1 }
 0xc72   :  { %v2310_v31 = vsel %vm502_vm7, %v2304_v16, -inf }
 0xc73   :  { %2311 = vmax.xlane.f32.xlu0 %v2310_v31  ;;  %2139 = vmax.xlane.f32.xlu1 %v2138_v32 }
 0xc84   :  { %2409 = vrot.lane.b32.xlu1 %v2330_v28, %s4498_s19 }
 0xc89   :  { %2332 = vrot.lane.b32.xlu0 %v2329_v34, %s4498_s19 }
 0xcf8   :  { %v2309_v35 = vpop.xlane.xlu1 %2308 }
 0xcf9   :  { %v2313_v36 = vsub.f32 %v2231_v17, %v2309_v35  ;;  %v2639_v17 = vmul.f32 %v4988_v59, %v4839_v33 }
 0xcfb   :  { %v2315_v29 = vmul.f32 1.442695, %v2313_v36 }
 0xcfc   :  { %v2137_v38 = vpop.xlane.xlu1 %2136 }
 0xcfd   :  { %4282 = vpow2.f32 %v2315_v29  ;;  %v2141_v39 = vsub.f32 %v2056_v22, %v2137_v38 }
 0xcff   :  { %v2143_v40 = vmul.f32 1.442695, %v2141_v39 }
 0xd00   :  { %v2140_v41 = vpop.xlane.xlu1 %2139  ;;  %v2312_v42 = vpop.xlane.xlu0 %2311 }
 0xd01   :  { %4284 = vpow2.f32 %v2143_v40  ;;  %v2142_v43 = vsub.f32 %v2132_v6, %v2140_v41  ;;  %v2314_v44 = vsub.f32 %v2304_v16, %v2312_v42  ;;  %v2809_v41 = vmul.f32 %v4953_v15, %v4871_v55 }
 0xd02   :  { %v2810_v42 = vmul.f32 %v4951_v14, %v4871_v55  ;;  %v2967_v55 = vmul.f32 %v4988_v59, %v4885_v5  ;;  %v2968_v59 = vmul.f32 %v4986_v58, %v4885_v5 }
 0xd03   :  { %v2145_v45 = vmul.f32 1.442695, %v2142_v43  ;;  %v2317_v46 = vmul.f32 1.442695, %v2314_v44 }
 0xd04   :  { %v2410_v20 = vpop.permute.xlu1 %2409  ;;  %v2333_v47 = vpop.permute.xlu0 %2332 }
 0xd05   :  { %4286 = vpow2.f32 %v2145_v45  ;;  %4033 = vmatpush3.msra.mxu0 %v2333_v47  ;;  %4038 = vmatpush3.msra.mxu1 %v2410_v20 }
 0xd06   :  { %4042 = vmatprep.subr.mxu0 %v4494_v0  ;;  %4047 = vmatprep.subr.mxu1 %v4494_v0  ;;  %4288 = vpow2.f32 %v2317_v46 }
 0xd07   :  { %v4283_v62 = vpop.eup %4282 }
 0xd08   :  { %v2319_v48 = vsel %vm502_vm7, %v4283_v62, 0.0 }
 0xd09   :  { %2320 = vadd.xlane.f32.xlu1 %v2319_v48 }
 0xd0b   :  { %v4285_v21 = vpop.eup %4284 }
 0xd0c   :  { %v2147_v49 = vsel %vm502_vm7, %v4285_v21, 0.0 }
 0xd0d   :  { %2148 = vadd.xlane.f32.xlu0 %v2147_v49 }
 0xd0f   :  { %v4287_v50 = vpop.eup %4286 }
 0xd10   :  { %v2150_v52 = vsel %vm502_vm7, %v4287_v50, 0.0  ;;  %v4289_v54 = vpop.eup %4288 }
 0xd11   :  { %2151 = vadd.xlane.f32.xlu1 %v2150_v52  ;;  %v2322_v56 = vsel %vm502_vm7, %v4289_v54, 0.0 }
 0xd15   :  { %2323 = vadd.xlane.f32.xlu1 %v2322_v56 }
 0xd23   :  { %2563 = vrot.lane.b32.xlu0 %v2158_v57, %s4498_s19 }
 0xd26   :  { %2486 = vrot.lane.b32.xlu1 %v2157_v60, %s4498_s19 }
 0xd96   :  { %v2321_v61 = vpop.xlane.xlu1 %2320 }
 0xd97   :  { %4290 = vrcp.f32 %v2321_v61 }
 0xd9a   :  { %v2149_v63 = vpop.xlane.xlu0 %2148 }
 0xd9b   :  { %4292 = vrcp.f32 %v2149_v63 }
 0xd9e   :  { %v2152_v2 = vpop.xlane.xlu1 %2151  ;;  %v2564_v11 = vpop.permute.xlu0 %2563 }
 0xda1   :  { %v4291_v19 = vpop.eup %4290 }
 0xda2   :  { %v2327_v3 = vmul.f32 %v4291_v19, %v4283_v62  ;;  %v2324_v4 = vpop.xlane.xlu1 %2323 }
 0xda3   :  { %4294 = vrcp.f32 %v2324_v4 }
 0xda4   :  { %4035 = vmatmul.mubr.msk.f32.vlgmr.msra.gmra.mrb[16].mxu0 %vm502_vm7, %v2327_v3  ;;  %4296 = vrcp.f32 %v2152_v2 }
 0xda5   :  { %4044 = vmatprep.mubr.msk.f32.mxu0 %vm4495_vm1, %v4494_v0  ;;  %v4293_v8 = vpop.eup %4292 }
 0xda6   :  { %v2487_v7 = vpop.permute.xlu1 %2486  ;;  %v2155_v1 = vmul.f32 %v4293_v8, %v4285_v21 }
 0xda7   :  { %4043 = vmatpush3.msra.mxu0 %v2487_v7  ;;  %v3138_v7 = vmul.f32 %v4951_v14, %v4916_v37 }
 0xda8   :  { %4052 = vmatprep.subr.mxu0 %v4494_v0 }
 0xdac   :  { %4045 = vmatmul.mubr.msk.f32.vlgmr.msra.gmra.mrb[16].mxu0 %vm502_vm7, %v2155_v1 }
 0xdad   :  { %v4295_v10 = vpop.eup %4294  ;;  %4054 = vmatprep.mubr.msk.f32.mxu0 %vm4495_vm1, %v4494_v0 }
 0xdae   :  { %v2328_v23 = vmul.f32 %v4295_v10, %v4289_v54  ;;  %4053 = vmatpush3.xpose.msk.msra.mxu0 %vm191_vm0, %v4953_v15  ;;  %v4297_v12 = vpop.eup %4296 }
 0xdaf   :  { %4062 = vmatprep.subr.mxu0 %v4494_v0  ;;  %v2156_v22 = vmul.f32 %v4297_v12, %v4287_v50 }
 0xdb0   :  { %4040 = vmatmul.mubr.msk.f32.vlgmr.msra.gmra.mrb[22].mxu1 %vm502_vm7, %v2328_v23 }
 0xdb1   :  { %4048 = vmatpush3.msra.mxu1 %v2564_v11  ;;  %4055 = vmatmul.mubr.msk.f32.vlgmr.msra.gmra.mrb[18].mxu0 %vm191_vm0, %v2639_v17 }
 0xdb2   :  { %4049 = vmatprep.mubr.msk.f32.mxu1 %vm4495_vm1, %v4494_v0  ;;  %4057 = vmatprep.subr.mxu1 %v4494_v0 }
 0xdb3   :  { %4064 = vmatprep.mubr.msk.f32.mxu0 %vm4495_vm1, %v4494_v0 }
 0xdb8   :  { %4050 = vmatmul.mubr.msk.f32.vlgmr.msra.gmra.mrb[22].mxu1 %vm502_vm7, %v2156_v22  ;;  %v1815_v22 = vld [vmem:[#allocation10] sm:$0xff] }
 0xdb9   :  { %4058 = vmatpush3.xpose.msk.msra.mxu1 %vm191_vm0, %v4951_v14  ;;  %4059 = vmatprep.mubr.msk.f32.mxu1 %vm4495_vm1, %v4494_v0 }
 0xdba   :  { %4067 = vmatprep.subr.mxu1 %v4494_v0 }
 0xdbc   :  { %4060 = vmatmul.mubr.msk.f32.vlgmr.msra.gmra.mrb[24].mxu1 %vm191_vm0, %v2640_v27 }
 0xdbd   :  { %4069 = vmatprep.mubr.msk.f32.mxu1 %vm4495_vm1, %v4494_v0 }
 0xe84   :  { %v2710_v24 = vpop.f32.mrb[18].mxu0 }
 0xe85   :  { %v2711_v25 = vadd.f32 %v2710_v24, %v5019_v9  ;;  %v4056_v6 = vpop.f32.mrb[19].mxu0  ;;  %v1818_v24 = vld [vmem:[#allocation10 + $0x18] sm:$0xff] }
 0xe87   :  { %v2787_v18 = vsel %vm502_vm7, %v2711_v25, -inf }
 0xe88   :  { %2788 = vmax.xlane.f32.xlu1 %v2787_v18 }
 0xe8f   :  { %v2783_v26 = vpop.f32.mrb[24].mxu1 }
 0xe90   :  { %v2784_v16 = vadd.f32 %v2783_v26, %v5026_v13  ;;  %v4061_v30 = vpop.f32.mrb[25].mxu1 }
 0xe92   :  { %v2790_v33 = vsel %vm502_vm7, %v2784_v16, -inf }
 0xe93   :  { %2791 = vmax.xlane.f32.xlu0 %v2790_v33 }
 0xf15   :  { %v2789_v31 = vpop.xlane.xlu1 %2788 }
 0xf16   :  { %v2793_v32 = vsub.f32 %v2711_v25, %v2789_v31 }
 0xf18   :  { %v2795_v28 = vmul.f32 1.442695, %v2793_v32 }
 0xf1a   :  { %4298 = vpow2.f32 %v2795_v28 }
 0xf20   :  { %v2792_v34 = vpop.xlane.xlu0 %2791 }
 0xf21   :  { %v2794_v35 = vsub.f32 %v2784_v16, %v2792_v34 }
 0xf23   :  { %v2797_v36 = vmul.f32 1.442695, %v2794_v35 }
 0xf24   :  { %v4299_v29 = vpop.eup %4298 }
 0xf25   :  { %4300 = vpow2.f32 %v2797_v36  ;;  %v2799_v38 = vsel %vm502_vm7, %v4299_v29, 0.0 }
 0xf26   :  { %2800 = vadd.xlane.f32.xlu0 %v2799_v38 }
 0xf2f   :  { %v4301_v39 = vpop.eup %4300 }
 0xf30   :  { %v2802_v40 = vsel %vm502_vm7, %v4301_v39, 0.0 }
 0xf31   :  { %2803 = vadd.xlane.f32.xlu1 %v2802_v40 }
 0xf3c   :  { %2812 = vrot.lane.b32.xlu0 %v2809_v41, %s4498_s19 }
 0xf42   :  { %2889 = vrot.lane.b32.xlu1 %v2810_v42, %s4498_s19 }
 0xfb3   :  { %v2801_v43 = vpop.xlane.xlu0 %2800 }
 0xfb4   :  { %4302 = vrcp.f32 %v2801_v43 }
 0xfb7   :  { %v2813_v44 = vpop.permute.xlu0 %2812 }
 0xfb8   :  { %4063 = vmatpush3.msra.mxu0 %v2813_v44  ;;  %v3425_v44 = vld [vmem:[#allocation11 + $0x8] sm:$0xff] }
 0xfb9   :  { %4072 = vmatprep.subr.mxu0 %v4494_v0 }
 0xfbe   :  { %v4303_v45 = vpop.eup %4302  ;;  %v2804_v46 = vpop.xlane.xlu1 %2803 }
 0xfbf   :  { %v2807_v20 = vmul.f32 %v4303_v45, %v4299_v29  ;;  %4304 = vrcp.f32 %v2804_v46  ;;  %v3426_v46 = vld [vmem:[#allocation11 + $0x10] sm:$0xff] }
 0xfc1   :  { %4065 = vmatmul.mubr.msk.f32.vlgmr.msra.gmra.mrb[16].mxu0 %vm502_vm7, %v2807_v20  ;;  %v3427_v20 = vld [vmem:[#allocation11 + $0x18] sm:$0xff] }
 0xfc2   :  { %4073 = vmatpush3.xpose.msk.msra.mxu0 %vm191_vm0, %v4953_v15  ;;  %v2890_v47 = vpop.permute.xlu1 %2889  ;;  %4074 = vmatprep.mubr.msk.f32.mxu0 %vm4495_vm1, %v4494_v0 }
 0xfc3   :  { %4068 = vmatpush3.msra.mxu1 %v2890_v47  ;;  %4082 = vmatprep.subr.mxu0 %v4494_v0  ;;  %v4185_v47 = vpack.c.bf16 %v3427_v20, %v3426_v46  ;;  %v3759_v46 = vld [vmem:[%s5217_s13 + $0x2] ss:$0 sm:$0xff] }
 0xfc4   :  { %4077 = vmatprep.subr.mxu1 %v4494_v0 }
 0xfc5   :  { %4075 = vmatmul.mubr.msk.f32.vlgmr.msra.gmra.mrb[20].mxu0 %vm191_vm0, %v2967_v55  ;;  %v3518_v55 = vld [vmem:[%s5215_s11] sm:$0xff] }
 0xfc6   :  { %4084 = vmatprep.mubr.msk.f32.mxu0 %vm4495_vm1, %v4494_v0 }
 0xfc9   :  { %v4305_v62 = vpop.eup %4304 }
 0xfca   :  { %v2808_v48 = vmul.f32 %v4305_v62, %v4301_v39  ;;  %v3519_v62 = vld [vmem:[%s5215_s11 + $0x8] sm:$0xff] }
 0xfcc   :  { %4070 = vmatmul.mubr.msk.f32.vlgmr.msra.gmra.mrb[22].mxu1 %vm502_vm7, %v2808_v48  ;;  %v3520_v48 = vld [vmem:[%s5215_s11 + $0x10] sm:$0xff] }
 0xfcd   :  { %4078 = vmatpush3.xpose.msk.msra.mxu1 %vm191_vm0, %v4951_v14  ;;  %4079 = vmatprep.mubr.msk.f32.mxu1 %vm4495_vm1, %v4494_v0  ;;  %v1817_v14 = vld [vmem:[#allocation10 + $0x10] sm:$0xff] }
 0xfce   :  { %4087 = vmatprep.subr.mxu1 %v4494_v0  ;;  %v4177_v25 = vpack.c.bf16 %v1818_v24, %v1817_v14 }
 0xfd0   :  { %4080 = vmatmul.mubr.msk.f32.vlgmr.msra.gmra.mrb[26].mxu1 %vm191_vm0, %v2968_v59  ;;  %v4189_v59 = vpack.c.bf16 %v3519_v62, %v3518_v55  ;;  %v3760_v62 = vld [vmem:[%s5218_s14 + $0x2] ss:$0 sm:$0xff] }
 0xfd1   :  { %4089 = vmatprep.mubr.msk.f32.mxu1 %vm4495_vm1, %v4494_v0  ;;  %vm3533_vm1 = vcmask 523264  }
0x1098   :  { %v3038_v21 = vpop.f32.mrb[20].mxu0 }
0x1099   :  { %v3039_v49 = vadd.f32 %v3038_v21, %v5019_v9  ;;  %v4076_v50 = vpop.f32.mrb[21].mxu0  ;;  %v3521_v21 = vld [vmem:[%s5215_s11 + $0x18] sm:$0xff] }
0x109a   :  { %v3522_v50 = vld [vmem:[%s5215_s11 + $0x20] sm:$0xff] }
0x109b   :  { %v3115_v52 = vsel %vm502_vm7, %v3039_v49, -inf }
0x109c   :  { %3116 = vmax.xlane.f32.xlu1 %v3115_v52  ;;  %v3523_v52 = vld [vmem:[%s5215_s11 + $0x28] sm:$0xff] }
0x10a3   :  { %v3111_v54 = vpop.f32.mrb[26].mxu1 }
0x10a4   :  { %v3112_v56 = vadd.f32 %v3111_v54, %v5026_v13  ;;  %v4081_v57 = vpop.f32.mrb[27].mxu1  ;;  %v3137_v13 = vmul.f32 %v4953_v15, %v4916_v37  ;;  %v1816_v37 = vld [vmem:[#allocation10 + $0x8] sm:$0xff]  ;;  %v4197_v54 = vpack.c.bf16 %v3523_v52, %v3522_v50 }
0x10a5   :  { %v4173_v27 = vpack.c.bf16 %v1816_v37, %v1815_v22 }
0x10a6   :  { %v3118_v5 = vsel %vm502_vm7, %v3112_v56, -inf }
0x10a7   :  { %3119 = vmax.xlane.f32.xlu0 %v3118_v5 }
0x1129   :  { %v3117_v58 = vpop.xlane.xlu1 %3116 }
0x112a   :  { %v3121_v60 = vsub.f32 %v3039_v49, %v3117_v58  ;;  %v4193_v49 = vpack.c.bf16 %v3521_v21, %v3520_v48 }
0x112c   :  { %v3123_v61 = vmul.f32 1.442695, %v3121_v60 }
0x112e   :  { %4306 = vpow2.f32 %v3123_v61 }
0x1134   :  { %v3120_v63 = vpop.xlane.xlu0 %3119 }
0x1135   :  { %v3122_v0 = vsub.f32 %v3112_v56, %v3120_v63 }
0x1137   :  { %v3125_v2 = vmul.f32 1.442695, %v3122_v0  ;;  %v3749_v0 = vld [vmem:[%s5217_s13 + $0x1] ss:$0 sm:$0xff] }
0x1138   :  { %v4307_v19 = vpop.eup %4306 }
0x1139   :  { %4308 = vpow2.f32 %v3125_v2  ;;  %v3127_v9 = vsel %vm502_vm7, %v4307_v19, 0.0 }
0x113a   :  { %3128 = vadd.xlane.f32.xlu0 %v3127_v9 }
0x1143   :  { %v4309_v3 = vpop.eup %4308 }
0x1144   :  { %v3130_v4 = vsel %vm502_vm7, %v4309_v3, 0.0 }
0x1145   :  { %3131 = vadd.xlane.f32.xlu1 %v3130_v4 }
0x1150   :  { %3140 = vrot.lane.b32.xlu0 %v3137_v13, %s4498_s19 }
0x1156   :  { %3217 = vrot.lane.b32.xlu1 %v3138_v7, %s4498_s19 }
0x11c7   :  { %v3129_v8 = vpop.xlane.xlu0 %3128 }
0x11c8   :  { %4310 = vrcp.f32 %v3129_v8 }
0x11cb   :  { %v3141_v1 = vpop.permute.xlu0 %3140 }
0x11cc   :  { %4083 = vmatpush3.msra.mxu0 %v3141_v1  ;;  %v3524_v1 = vld [vmem:[%s5215_s11 + $0x30] sm:$0xff] }
0x11cd   :  { %4174 = vmatprep.subr.bf16.mxu0 %v4173_v27 }
0x11d2   :  { %v4311_v10 = vpop.eup %4310  ;;  %v3132_v23 = vpop.xlane.xlu1 %3131 }
0x11d3   :  { %v3135_v17 = vmul.f32 %v4311_v10, %v4307_v19  ;;  %4312 = vrcp.f32 %v3132_v23  ;;  %v3525_v10 = vld [vmem:[%s5215_s11 + $0x38] sm:$0xff] }
0x11d4   :  { %v4201_v23 = vpack.c.bf16 %v3525_v10, %v3524_v1 }
0x11d5   :  { %4085 = vmatmul.mubr.msk.f32.vlgmr.msra.gmra.mrb[16].mxu0 %vm502_vm7, %v3135_v17  ;;  %v3751_v17 = vld [vmem:[%s5214_s10] ss:$0 sm:$0xff] }
0x11d6   :  { %v3218_v11 = vpop.permute.xlu1 %3217  ;;  %4176 = vmatpush3.bf16.msra.mxu0 %v4173_v27  ;;  %v3754_v27 = vld [vmem:[%s5216_s12] ss:$0 sm:$0xff] }
0x11d7   :  { %4088 = vmatpush3.msra.mxu1 %v3218_v11  ;;  %4178 = vmatprep.subr.bf16.mxu0 %v4177_v25 }
0x11da   :  { %4180 = vmatpush3.bf16.msra.mxu0 %v4177_v25 }
0x11db   :  { %4190 = vmatprep.subr.bf16.mxu0 %v4189_v59 }
0x11dd   :  { %v4313_v15 = vpop.eup %4312 }
0x11de   :  { %v3136_v12 = vmul.f32 %v4313_v15, %v4309_v3  ;;  %v3750_v3 = vld [vmem:[%s5218_s14 + $0x1] ss:$0 sm:$0xff] }
0x11e0   :  { %4090 = vmatmul.mubr.msk.f32.vlgmr.msra.gmra.mrb[22].mxu1 %vm502_vm7, %v3136_v12 }
0x12a8   :  { %v3212_v6 = vpop.f32.mrb[16].mxu0 }
0x12a9   :  { %v4086_v18 = vpop.f32.mrb[17].mxu0  ;;  %4100 = vmatprep.mubr.msk.f32.mxu0 %vm191_vm0, %v3212_v6 }
0x12b3   :  { %v3289_v26 = vpop.f32.mrb[22].mxu1 }
0x12b4   :  { %v4091_v16 = vpop.f32.mrb[23].mxu1  ;;  %4101 = vmatmul.mubr.msk.f32.vlgmr.msra.gmra.mrb[22].mxu0 %vm191_vm0, %v3289_v26 }
0x12b5   :  { %4192 = vmatpush3.bf16.msra.mxu0 %v4189_v59 }
0x12b6   :  { %4194 = vmatprep.subr.bf16.mxu0 %v4193_v49 }
0x12b9   :  { %4196 = vmatpush3.bf16.msra.mxu0 %v4193_v49 }
0x12ba   :  { %4198 = vmatprep.subr.bf16.mxu0 %v4197_v54 }
0x12bd   :  { %4200 = vmatpush3.bf16.msra.mxu0 %v4197_v54 }
0x12be   :  { %4202 = vmatprep.subr.bf16.mxu0 %v4201_v23 }
0x12c1   :  { %4204 = vmatpush3.bf16.msra.mxu0 %v4201_v23 }
0x1387   :  { %v4102_v30 = vpop.f32.mrb[22].mxu0 }
0x1388   :  { %v3377_v33 = vadd.f32 %v4102_v30, %v4971_v53  ;;  %v3367_v31 = vpop.f32.mrb[23].mxu0 }
0x1389   :  { %v3376_v32 = vadd.f32 %v3367_v31, %v4967_v51  ;;  %v3424_v51 = vld [vmem:[#allocation11] sm:$0xff] }
0x138a   :  { %v3385_v28 = vsel %vm191_vm0, %v3377_v33, 0.0  ;;  %v4181_v45 = vpack.c.bf16 %v3425_v44, %v3424_v51 }
0x138b   :  { %3386 = vadd.xlane.f32.xlu0 %v3385_v28  ;;  %v3382_v34 = vsel %vm191_vm0, %v3376_v32, 0.0 }
0x138c   :  { %3383 = vadd.xlane.f32.xlu1 %v3382_v34  ;;  %4182 = vmatprep.subr.bf16.mxu1 %v4181_v45 }
0x138d   :  { %4184 = vmatpush3.bf16.msra.mxu1 %v4181_v45 }
0x138e   :  { %4186 = vmatprep.subr.bf16.mxu1 %v4185_v47 }
0x1391   :  { %4188 = vmatpush3.bf16.msra.mxu1 %v4185_v47 }
0x1418   :  { %v3387_v35 = vpop.xlane.xlu0 %3386 }
0x1419   :  { %v3389_v36 = vmul.f32 0.03125, %v3387_v35  ;;  %v3384_v29 = vpop.xlane.xlu1 %3383 }
0x141a   :  { %v3388_v38 = vmul.f32 0.03125, %v3384_v29 }
0x141b   :  { %v3391_v39 = vsub.f32 %v3377_v33, %v3389_v36 }
0x141c   :  { %v3390_v40 = vsub.f32 %v3376_v32, %v3388_v38 }
0x141d   :  { %v3393_v41 = vmul.f32 %v3391_v39, %v3391_v39 }
0x141e   :  { %v3392_v42 = vmul.f32 %v3390_v40, %v3390_v40 }
0x141f   :  { %v3397_v43 = vsel %vm191_vm0, %v3393_v41, 0.0 }
0x1420   :  { %3398 = vadd.xlane.f32.xlu1 %v3397_v43  ;;  %v3394_v53 = vsel %vm191_vm0, %v3392_v42, 0.0 }
0x1421   :  { %3395 = vadd.xlane.f32.xlu0 %v3394_v53 }
0x14ad   :  { %v3399_v56 = vpop.xlane.xlu1 %3398 }
0x14ae   :  { %v3401_v57 = vmul.f32 0.03125, %v3399_v56  ;;  %v3396_v5 = vpop.xlane.xlu0 %3395 }
0x14af   :  { %v3400_v58 = vmul.f32 0.03125, %v3396_v5 }
0x14b0   :  { %v3403_v60 = vadd.f32 1e-05, %v3401_v57 }
0x14b1   :  { %v3402_v61 = vadd.f32 1e-05, %v3400_v58 }
0x14b2   :  { %4314 = vrsqrt.f32 %v3403_v60 }
0x14b3   :  { %4316 = vrsqrt.f32 %v3402_v61 }
0x14bc   :  { %v4315_v63 = vpop.eup %4314 }
0x14bd   :  { %v4317_v2 = vpop.eup %4316  ;;  %v3407_v19 = vmul.f32 %v4315_v63, %v3391_v39 }
0x14be   :  { %v3406_v9 = vmul.f32 %v4317_v2, %v3390_v40 }
0x14bf   :  { %v3415_v4 = vmul.f32 %v3749_v0, %v3407_v19 }
0x14c0   :  { %v3414_v13 = vmul.f32 %v3749_v0, %v3406_v9 }
0x14c1   :  { %v3423_v8 = vadd.f32 %v3750_v3, %v3415_v4 }
0x14c2   :  { %v3422_v7 = vadd.f32 %v3750_v3, %v3414_v13 }
0x14c4   :  { %4111 = vmatprep.mubr.msk.f32.mxu1 %vm191_vm0, %v3422_v7 }
0x14c5   :  { %4112 = vmatmul.mubr.msk.f32.vlgmr.msra.gmra.mrb[28].mxu1 %vm191_vm0, %v3423_v8 }
0x1598   :  { %v4113_v11 = vpop.f32.mrb[28].mxu1 }
0x1599   :  { %v3513_v15 = vadd.f32 %v4113_v11, %v3751_v17  ;;  %v3507_v12 = vpop.f32.mrb[29].mxu1 }
0x159a   :  { %v3508_v22 = vadd.f32 %v3751_v17, %v3507_v12 }
0x159b   :  { %v3517_v14 = vmax.f32 %v3513_v15, 0.0 }
0x159c   :  { %v3516_v37 = vmax.f32 %v3508_v22, 0.0 }
0x159e   :  { %4130 = vmatprep.mubr.msk.f32.mxu0 %vm3533_vm1, %v3516_v37 }
0x159f   :  { %4131 = vmatmul.mubr.msk.f32.vlgmr.msra.gmra.mrb[24].mxu0 %vm3533_vm1, %v3517_v14 }
0x1672   :  { %v4132_v24 = vpop.f32.mrb[24].mxu0 }
0x1673   :  { %v3612_v25 = vadd.f32 %v4132_v24, %v3754_v27  ;;  %v3606_v6 = vpop.f32.mrb[25].mxu0 }
0x1674   :  { %v3607_v18 = vadd.f32 %v3754_v27, %v3606_v6 }
0x1675   :  { %v3616_v26 = vadd.f32 %v3612_v25, %v3423_v8 }
0x1676   :  { %v3615_v16 = vadd.f32 %v3607_v18, %v3422_v7 }
0x1677   :  { %v3624_v30 = vsel %vm191_vm0, %v3616_v26, 0.0 }
0x1678   :  { %3625 = vadd.xlane.f32.xlu1 %v3624_v30  ;;  %v3621_v33 = vsel %vm191_vm0, %v3615_v16, 0.0 }
0x1679   :  { %3622 = vadd.xlane.f32.xlu0 %v3621_v33 }
0x1705   :  { %v3626_v31 = vpop.xlane.xlu1 %3625 }
0x1706   :  { %v3628_v32 = vmul.f32 0.03125, %v3626_v31  ;;  %v3623_v28 = vpop.xlane.xlu0 %3622 }
0x1707   :  { %v3627_v34 = vmul.f32 0.03125, %v3623_v28 }
0x1708   :  { %v3630_v35 = vsub.f32 %v3616_v26, %v3628_v32 }
0x1709   :  { %v3629_v36 = vsub.f32 %v3615_v16, %v3627_v34 }
0x170a   :  { %v3632_v29 = vmul.f32 %v3630_v35, %v3630_v35 }
0x170b   :  { %v3631_v38 = vmul.f32 %v3629_v36, %v3629_v36 }
0x170c   :  { %v3636_v39 = vsel %vm191_vm0, %v3632_v29, 0.0 }
0x170d   :  { %3637 = vadd.xlane.f32.xlu1 %v3636_v39  ;;  %v3633_v40 = vsel %vm191_vm0, %v3631_v38, 0.0 }
0x170e   :  { %3634 = vadd.xlane.f32.xlu0 %v3633_v40 }
0x179a   :  { %v3638_v41 = vpop.xlane.xlu1 %3637 }
0x179b   :  { %v3640_v42 = vmul.f32 0.03125, %v3638_v41  ;;  %v3635_v43 = vpop.xlane.xlu0 %3634 }
0x179c   :  { %v3639_v53 = vmul.f32 0.03125, %v3635_v43 }
0x179d   :  { %v3642_v51 = vadd.f32 1e-05, %v3640_v42 }
0x179e   :  { %v3641_v44 = vadd.f32 1e-05, %v3639_v53 }
0x179f   :  { %4318 = vrsqrt.f32 %v3642_v51 }
0x17a0   :  { %4320 = vrsqrt.f32 %v3641_v44 }
0x17a9   :  { %v4319_v45 = vpop.eup %4318 }
0x17aa   :  { %v4321_v20 = vpop.eup %4320  ;;  %v3646_v47 = vmul.f32 %v4319_v45, %v3630_v35 }
0x17ab   :  { %v3645_v55 = vmul.f32 %v4321_v20, %v3629_v36 }
0x17ac   :  { %v3654_v48 = vmul.f32 %v3759_v46, %v3646_v47 }
0x17ad   :  { %v3653_v59 = vmul.f32 %v3759_v46, %v3645_v55 }
0x17ae   :  { %v3662_v21 = vadd.f32 %v3760_v62, %v3654_v48 }
0x17af   :  { %v3661_v49 = vadd.f32 %v3760_v62, %v3653_v59 }
0x17b0   :  { %3664 = vst.msk [vmem:[#allocation13 + $0x8] sm:$0xff] %vm191_vm0, %v3662_v21 }
0x17b1   :  { %3663 = vst.msk [vmem:[#allocation13] sm:$0xff] %vm191_vm0, %v3661_v49 }
0x17b2   :  { %4465 = shalt.err (!%p4462_p10)
}
0x17b3   :  { %s4466_s4 = scalar_lea.hbm %s5219_s15, 256 }
0x17b4   :  { %p4467_p11 = scmp.ne.s32.totalorder %s5219_s15, %s4466_s4  ;;  %p4470_p12 = scmp.lt.u32.totalorder %s4466_s4, %s5219_s15 }
0x17b6   :  { %p4472_p13 = pnand %p4470_p12, %p4467_p11 }
0x17b8   :  { %4475 = shalt.err (!%p4472_p13)
}
0x17b9   :  { %3676 = dma.vmem_to_hbm [thread:$0]  %s3671_s7, 256, %s5219_s15, [#allocation4], %s4488_s30, %s4488_s30, %s4489_s16  }
0x17ba   :  { %4484 = dma.done.wait [#allocation4], 256  }
0x17bb   :  { %4485 = vsyncadd [#allocation4], 4294967040 }
0x17bc   :  { %3680 = vsyncpa [#allocation3], 1 }
0x17bd   :  { %3681 = vsyncpa [#allocation6], 1 }
0x17be   :  { %3682 = vsyncpa [#allocation9], 1 }
0x17bf   :  { %3683 = vsyncpa [#allocation12], 1 }
0x17c0   :  { %3684 = vsyncpa [#allocation4], 1 }

</bundles_post_ra>
